<compile_context>
chip_gen: v7x
topology: tpu7x:2x2x1
jax: 0.10.0
libtpu: 0.0.40
codegen_flags: <defaults>
</compile_context>

<pallas_src>
import math

import numpy as np
import jax
import jax.numpy as jnp
from jax.experimental import pallas as pl
from jax.experimental.pallas import tpu as pltpu

# ----------------------- small Whisper-like config -----------------------
NUM_MEL     = 8     # whisper num_mel_bins (small)
D_MODEL     = 32    # whisper d_model (small)
N_HEADS     = 4
HEAD_DIM    = D_MODEL // N_HEADS
FFN_DIM     = 64
N_LAYERS    = 2
NUM_CLASSES = 10
SEQ_T       = 16    # input mel frames; conv2 stride-2 -> SEQ_T2 positions
SEQ_T2      = SEQ_T // 2
CONV_K      = 3
LN_EPS      = 1e-5

# ---------------- row layout of the packed "vecs" slab [VEC_ROWS, 128] ----
ROW_POS    = 0                 # rows 0..SEQ_T2-1 : positional embedding
ROW_CONV1B = SEQ_T2            # conv1 bias
ROW_CONV2B = SEQ_T2 + 1        # conv2 bias
ROW_LNF_G  = SEQ_T2 + 2        # final LN gamma
ROW_LNF_B  = SEQ_T2 + 3        # final LN beta
ROW_CLS_B  = SEQ_T2 + 4        # classifier bias (cols 0:NUM_CLASSES)
ROW_LAYER0 = 16                # 8-aligned start of per-layer blocks
ROWS_PER_LAYER = 8
(L_LN1G, L_LN1B, L_LN2G, L_LN2B, L_BQKV, L_BO, L_BM1, L_BM2) = range(8)
VEC_ROWS = ROW_LAYER0 + ROWS_PER_LAYER * N_LAYERS      # 32
VEC_COLS = 128


def _gelu(x):
    # exact (erf) GELU, matching torch.nn.functional.gelu default
    return 0.5 * x * (1.0 + jax.lax.erf(x * (1.0 / math.sqrt(2.0))))


# ----------------------------- fused kernel -------------------------------

def _whisper_fused_kernel(x_ref,                 # [1, T, NUM_MEL]   one batch
                          convw_ref,             # [K*(Cin+D), D]    conv1|conv2 taps
                          wqkv_ref,              # [L, D, 3D]        q pre-scaled
                          wo_ref,                # [L, D, D]
                          wm1_ref,               # [L, D, F]
                          wm2_ref,               # [L, F, D]
                          vecs_ref,              # [VEC_ROWS, 128]   packed vectors
                          cw_ref,                # [D, C]            classifier weight
                          o_ref):                # [1, 1, C]
    f32 = jnp.float32

    def mm(a, b):
        return jnp.dot(a, b, preferred_element_type=f32)

    def vec(row, width=D_MODEL):
        return vecs_ref[row:row + 1, 0:width]               # [1, width]

    def layer_norm(x, g, b):
        # var = E[x^2] - mu^2 : both lane reductions issue back-to-back.
        mu = jnp.mean(x, axis=-1, keepdims=True)
        ms = jnp.mean(x * x, axis=-1, keepdims=True)
        return (x - mu) * jax.lax.rsqrt(ms - mu * mu + LN_EPS) * g + b

    def softmax_lastdim(s):
        m = jnp.max(s, axis=-1, keepdims=True)
        e = jnp.exp(s - m)
        return e * pl.reciprocal(jnp.sum(e, axis=-1, keepdims=True), approx=True)

    def shifted(x, t):
        # x[t-1] (zero at t=0) and x[t+1] (zero at t=T-1) via sublane rolls.
        rows = jax.lax.broadcasted_iota(jnp.int32, x.shape, 0)
        prev = jnp.where(rows == 0, 0.0, pltpu.roll(x, 1, 0))
        nxt = jnp.where(rows == t - 1, 0.0, pltpu.roll(x, t - 1, 0))
        return prev, nxt

    # ---------------- conv stem (im2col-by-roll, one matmul per conv) ------
    x = x_ref[0]                                            # [T, NUM_MEL]
    xp, xn = shifted(x, SEQ_T)
    cat1 = jnp.concatenate([xp, x, xn], axis=1)             # [T, 3*Cin]
    h = _gelu(mm(cat1, convw_ref[0:CONV_K * NUM_MEL, :]) + vec(ROW_CONV1B))

    hp, hn = shifted(h, SEQ_T)
    cat2 = jnp.concatenate([hp, h, hn], axis=1)             # [T, 3*D]
    # stride-2 row selection generated in-kernel (no HBM constant).
    orow = jax.lax.broadcasted_iota(jnp.int32, (SEQ_T2, SEQ_T), 0)
    irow = jax.lax.broadcasted_iota(jnp.int32, (SEQ_T2, SEQ_T), 1)
    sel = (irow == 2 * orow).astype(f32)                    # [T2, T]
    h = _gelu(mm(mm(sel, cat2),
                 convw_ref[CONV_K * NUM_MEL:CONV_K * (NUM_MEL + D_MODEL), :])
              + vec(ROW_CONV2B))                            # [T2, D]
    h = h + vecs_ref[ROW_POS:ROW_POS + SEQ_T2, 0:D_MODEL]   # + pos-emb

    # ---------------- transformer encoder layers ---------------------------
    for l in range(N_LAYERS):
        base = ROW_LAYER0 + l * ROWS_PER_LAYER

        # --- self attention (pre-LN); 1/sqrt(Dh) folded into Wq/bq ---
        xa = layer_norm(h, vec(base + L_LN1G), vec(base + L_LN1B))
        qkv = mm(xa, wqkv_ref[l]) + vec(base + L_BQKV, 3 * D_MODEL)  # [T2,3D]
        # heads batched on a leading (slow) axis: [H, T2, Dh]
        q3 = jnp.stack([qkv[:, hh * HEAD_DIM:(hh + 1) * HEAD_DIM]
                        for hh in range(N_HEADS)], axis=0)
        k3 = jnp.stack([qkv[:, D_MODEL + hh * HEAD_DIM:
                             D_MODEL + (hh + 1) * HEAD_DIM]
                        for hh in range(N_HEADS)], axis=0)
        v3 = jnp.stack([qkv[:, 2 * D_MODEL + hh * HEAD_DIM:
                             2 * D_MODEL + (hh + 1) * HEAD_DIM]
                        for hh in range(N_HEADS)], axis=0)
        s = jnp.einsum('hqd,hkd->hqk', q3, k3, preferred_element_type=f32)
        p = softmax_lastdim(s)                              # [H, T2, T2]
        o3 = jnp.einsum('hqk,hkd->hqd', p, v3, preferred_element_type=f32)
        attn = jnp.concatenate([o3[hh] for hh in range(N_HEADS)], axis=1)
        h = h + mm(attn, wo_ref[l]) + vec(base + L_BO)      # residual

        # --- MLP (pre-LN) ---
        xm = layer_norm(h, vec(base + L_LN2G), vec(base + L_LN2B))
        xm = _gelu(mm(xm, wm1_ref[l]) + vec(base + L_BM1, FFN_DIM))
        h = h + mm(xm, wm2_ref[l]) + vec(base + L_BM2)      # residual

    # ---------------- final LN + mean pool over time + classifier ----------
    h = layer_norm(h, vec(ROW_LNF_G), vec(ROW_LNF_B))
    pooled = jnp.mean(h, axis=0, keepdims=True)             # [1, D]
    logits = mm(pooled, cw_ref[...]) + vec(ROW_CLS_B, NUM_CLASSES)
    o_ref[...] = logits.reshape(1, 1, NUM_CLASSES).astype(o_ref.dtype)


# ------------------------ weight repacking (one-time) ----------------------

def prepare_kernel_params(params):
    """Re-pack module weights into the fused-kernel layout (done once, eagerly)."""
    scale = HEAD_DIM ** -0.5

    def tap_stack(w):   # torch conv weight [D_out, C_in, K] -> [K*C_in, D_out]
        w = np.asarray(w)
        return np.concatenate([w[:, :, k].T for k in range(CONV_K)], axis=0)

    kp = {}
    kp["convw"] = jnp.asarray(np.concatenate(
        [tap_stack(params["conv1_w"]), tap_stack(params["conv2_w"])], axis=0))

    wqkv, wo, wm1, wm2 = [], [], [], []
    for lp in params["layers"]:
        wqkv.append(jnp.concatenate([lp["wq"] * scale, lp["wk"], lp["wv"]], axis=1))
        wo.append(lp["wo"]); wm1.append(lp["w1"]); wm2.append(lp["w2"])
    kp["wqkv"] = jnp.stack(wqkv)        # [L, D, 3D]
    kp["wo"] = jnp.stack(wo)            # [L, D, D]
    kp["wm1"] = jnp.stack(wm1)          # [L, D, F]
    kp["wm2"] = jnp.stack(wm2)          # [L, F, D]
    kp["cls_w"] = params["cls_w"]       # [D, C]

    vecs = np.zeros((VEC_ROWS, VEC_COLS), np.float32)
    vecs[ROW_POS:ROW_POS + SEQ_T2, :D_MODEL] = np.asarray(params["pos_emb"])[:SEQ_T2]
    vecs[ROW_CONV1B, :D_MODEL] = np.asarray(params["conv1_b"]).reshape(-1)
    vecs[ROW_CONV2B, :D_MODEL] = np.asarray(params["conv2_b"]).reshape(-1)
    vecs[ROW_LNF_G, :D_MODEL] = np.asarray(params["lnf_g"]).reshape(-1)
    vecs[ROW_LNF_B, :D_MODEL] = np.asarray(params["lnf_b"]).reshape(-1)
    vecs[ROW_CLS_B, :NUM_CLASSES] = np.asarray(params["cls_b"]).reshape(-1)
    for l, lp in enumerate(params["layers"]):
        base = ROW_LAYER0 + l * ROWS_PER_LAYER
        vecs[base + L_LN1G, :D_MODEL] = np.asarray(lp["ln1_g"]).reshape(-1)
        vecs[base + L_LN1B, :D_MODEL] = np.asarray(lp["ln1_b"]).reshape(-1)
        vecs[base + L_LN2G, :D_MODEL] = np.asarray(lp["ln2_g"]).reshape(-1)
        vecs[base + L_LN2B, :D_MODEL] = np.asarray(lp["ln2_b"]).reshape(-1)
        vecs[base + L_BQKV, :3 * D_MODEL] = np.concatenate(
            [np.asarray(lp["bq"]).reshape(-1) * scale,
             np.zeros((D_MODEL,), np.float32),          # whisper k_proj: no bias
             np.asarray(lp["bv"]).reshape(-1)])
        vecs[base + L_BO, :D_MODEL] = np.asarray(lp["bo"]).reshape(-1)
        vecs[base + L_BM1, :FFN_DIM] = np.asarray(lp["b1"]).reshape(-1)
        vecs[base + L_BM2, :D_MODEL] = np.asarray(lp["b2"]).reshape(-1)
    kp["vecs"] = jnp.asarray(vecs)
    return kp


# ------------------------------ forward call --------------------------------

_CONST_ARGS = ("convw", "wqkv", "wo", "wm1", "wm2", "vecs", "cls_w")


def _const_spec(arr):
    zeros = (0,) * arr.ndim
    return pl.BlockSpec(arr.shape, lambda b, _z=zeros: _z)


def whisper_classifier_forward(kernel_params, input_features):
    B = input_features.shape[0]
    # NCT -> [B, T, NUM_MEL]; one grid step per batch element.
    x = jnp.transpose(input_features, (0, 2, 1))
    consts = tuple(kernel_params[k] for k in _CONST_ARGS)
    out = pl.pallas_call(
        _whisper_fused_kernel,
        out_shape=jax.ShapeDtypeStruct((B, 1, NUM_CLASSES), jnp.float32),
        grid=(B,),
        in_specs=[pl.BlockSpec((1, SEQ_T, NUM_MEL), lambda b: (b, 0, 0))]
                 + [_const_spec(c) for c in consts],
        out_specs=pl.BlockSpec((1, 1, NUM_CLASSES), lambda b: (b, 0, 0)),
        compiler_params=pltpu.CompilerParams(
            dimension_semantics=("parallel",)),
    )(x, *consts)
    return out.reshape(B, NUM_CLASSES)


# --------------------------- deterministic init ----------------------------

def _lin(key, fan_in, fan_out, bias=True):
    kw, kb = jax.random.split(key)
    w = jax.random.normal(kw, (fan_in, fan_out), jnp.float32) * 0.02
    b = (jax.random.normal(kb, (1, fan_out), jnp.float32) * 0.02
         if bias else jnp.zeros((1, fan_out), jnp.float32))
    return w, b


def init_params(key):
    keys = jax.random.split(key, 8 + N_LAYERS)
    p = {}
    p["conv1_w"] = jax.random.normal(keys[0], (D_MODEL, NUM_MEL, 3), jnp.float32) * 0.02
    p["conv1_b"] = jnp.zeros((D_MODEL,), jnp.float32)
    p["conv2_w"] = jax.random.normal(keys[1], (D_MODEL, D_MODEL, 3), jnp.float32) * 0.02
    p["conv2_b"] = jnp.zeros((D_MODEL,), jnp.float32)
    p["pos_emb"] = jax.random.normal(keys[2], (SEQ_T, D_MODEL), jnp.float32) * 0.02
    p["lnf_g"] = jnp.ones((1, D_MODEL), jnp.float32)
    p["lnf_b"] = jnp.zeros((1, D_MODEL), jnp.float32)
    p["cls_w"], p["cls_b"] = _lin(keys[3], D_MODEL, NUM_CLASSES)

    layers = []
    for li in range(N_LAYERS):
        lk = jax.random.split(keys[8 + li], 6)
        lp = {}
        lp["ln1_g"] = jnp.ones((1, D_MODEL), jnp.float32)
        lp["ln1_b"] = jnp.zeros((1, D_MODEL), jnp.float32)
        lp["ln2_g"] = jnp.ones((1, D_MODEL), jnp.float32)
        lp["ln2_b"] = jnp.zeros((1, D_MODEL), jnp.float32)
        lp["wq"], lp["bq"] = _lin(lk[0], D_MODEL, D_MODEL)
        lp["wk"], _        = _lin(lk[1], D_MODEL, D_MODEL, bias=False)
        lp["wv"], lp["bv"] = _lin(lk[2], D_MODEL, D_MODEL)
        lp["wo"], lp["bo"] = _lin(lk[3], D_MODEL, D_MODEL)
        lp["w1"], lp["b1"] = _lin(lk[4], D_MODEL, FFN_DIM)
        lp["w2"], lp["b2"] = _lin(lk[5], FFN_DIM, D_MODEL)
        layers.append(lp)
    p["layers"] = layers
    return p


# --------------------------------- main ------------------------------------

if __name__ == "__main__":
    root = jax.random.PRNGKey(0)
    k_in, k_par = jax.random.split(root)

    B = 2
    input_features = jax.random.normal(k_in, (B, NUM_MEL, SEQ_T), jnp.float32)
    params = init_params(k_par)
    kernel_params = prepare_kernel_params(params)   # one-time weight repack

    fwd = jax.jit(whisper_classifier_forward)
    logits = jax.block_until_ready(fwd(kernel_params, input_features))

    assert logits.shape == (B, NUM_CLASSES), logits.shape
    assert bool(jnp.all(jnp.isfinite(logits)))
    print("KERNEL_OK")
</pallas_src>

<mosaic_0001>
module attributes {stable_mosaic.version = 11 : i64} {
  func.func @_whisper_fused_kernel(%arg0: i32, %arg1: memref<1x16x8xf32, #tpu.memory_space<vmem>>, %arg2: memref<120x32xf32, #tpu.memory_space<vmem>>, %arg3: memref<2x32x96xf32, #tpu.memory_space<vmem>>, %arg4: memref<2x32x32xf32, #tpu.memory_space<vmem>>, %arg5: memref<2x32x64xf32, #tpu.memory_space<vmem>>, %arg6: memref<2x64x32xf32, #tpu.memory_space<vmem>>, %arg7: memref<32x128xf32, #tpu.memory_space<vmem>>, %arg8: memref<32x10xf32, #tpu.memory_space<vmem>>, %arg9: memref<1x1x10xf32, #tpu.memory_space<vmem>>) attributes {dimension_semantics = [#tpu.dimension_semantics<parallel>], iteration_bounds = array<i64: 2>, scalar_prefetch = 0 : i64, scratch_operands = 0 : i64, tpu.core_type = #tpu.core_type<tc>, window_params = [{transform_indices = @transform_0, window_bounds = array<i64: 1, 16, 8>}, {pipeline_mode = #tpu.pipeline_mode<synchronous>, transform_indices = @transform_1, window_bounds = array<i64: 120, 32>}, {pipeline_mode = #tpu.pipeline_mode<synchronous>, transform_indices = @transform_2, window_bounds = array<i64: 2, 32, 96>}, {pipeline_mode = #tpu.pipeline_mode<synchronous>, transform_indices = @transform_3, window_bounds = array<i64: 2, 32, 32>}, {pipeline_mode = #tpu.pipeline_mode<synchronous>, transform_indices = @transform_4, window_bounds = array<i64: 2, 32, 64>}, {pipeline_mode = #tpu.pipeline_mode<synchronous>, transform_indices = @transform_5, window_bounds = array<i64: 2, 64, 32>}, {pipeline_mode = #tpu.pipeline_mode<synchronous>, transform_indices = @transform_6, window_bounds = array<i64: 32, 128>}, {pipeline_mode = #tpu.pipeline_mode<synchronous>, transform_indices = @transform_7, window_bounds = array<i64: 32, 10>}, {transform_indices = @transform_8, window_bounds = array<i64: 1, 1, 10>}]} {
    %c0 = arith.constant 0 : index
    %c0_0 = arith.constant 0 : index
    %c0_1 = arith.constant 0 : index
    %0 = vector.load %arg1[%c0, %c0_0, %c0_1] : memref<1x16x8xf32, #tpu.memory_space<vmem>>, vector<1x16x8xf32>
    %1 = vector.shape_cast %0 : vector<1x16x8xf32> to vector<16x8xf32>
    %2 = tpu.iota {dimensions = array<i32: 0>} : vector<16x8xi32>
    %c0_i32 = arith.constant 0 : i32
    %3 = vector.broadcast %c0_i32 : i32 to vector<16x8xi32>
    %4 = arith.cmpi eq, %2, %3 : vector<16x8xi32>
    %c1_i32 = arith.constant 1 : i32
    %5 = tpu.dynamic_rotate %1 by %c1_i32 dim 0 : vector<16x8xf32>, i32 -> vector<16x8xf32>
    %cst = arith.constant 0.000000e+00 : f32
    %6 = vector.broadcast %cst : f32 to vector<16x8xf32>
    %7 = arith.select %4, %6, %5 : vector<16x8xi1>, vector<16x8xf32>
    %c15_i32 = arith.constant 15 : i32
    %8 = vector.broadcast %c15_i32 : i32 to vector<16x8xi32>
    %9 = arith.cmpi eq, %2, %8 : vector<16x8xi32>
    %c15_i32_2 = arith.constant 15 : i32
    %10 = tpu.dynamic_rotate %1 by %c15_i32_2 dim 0 : vector<16x8xf32>, i32 -> vector<16x8xf32>
    %cst_3 = arith.constant 0.000000e+00 : f32
    %11 = vector.broadcast %cst_3 : f32 to vector<16x8xf32>
    %12 = arith.select %9, %11, %10 : vector<16x8xi1>, vector<16x8xf32>
    %13 = tpu.concatenate %7, %1, %12 in 1 : vector<16x8xf32>, vector<16x8xf32>, vector<16x8xf32> -> vector<16x24xf32>
    %c0_4 = arith.constant 0 : index
    %c0_5 = arith.constant 0 : index
    %14 = vector.load %arg2[%c0_4, %c0_5] : memref<120x32xf32, #tpu.memory_space<vmem>>, vector<24x32xf32>
    %cst_6 = arith.constant dense<0.000000e+00> : vector<16x32xf32>
    %15 = tpu.matmul %13, %14, %cst_6 {dimension_numbers = #tpu.dot_dimension_numbers<[1], [0], [0], [1], [0, 0, 1, 1], [], []>} : vector<16x24xf32>, vector<24x32xf32>, vector<16x32xf32> -> vector<16x32xf32>
    %c8 = arith.constant 8 : index
    %c0_7 = arith.constant 0 : index
    %16 = vector.load %arg7[%c8, %c0_7] : memref<32x128xf32, #tpu.memory_space<vmem>>, vector<1x32xf32>
    %17 = vector.broadcast %16 : vector<1x32xf32> to vector<16x32xf32>
    %18 = arith.addf %15, %17 : vector<16x32xf32>
    %cst_8 = arith.constant 5.000000e-01 : f32
    %19 = vector.broadcast %cst_8 : f32 to vector<16x32xf32>
    %20 = arith.mulf %19, %18 : vector<16x32xf32>
    %cst_9 = arith.constant 0.707106769 : f32
    %21 = vector.broadcast %cst_9 : f32 to vector<16x32xf32>
    %22 = arith.mulf %18, %21 : vector<16x32xf32>
    %23 = math.erf %22 : vector<16x32xf32>
    %cst_10 = arith.constant 1.000000e+00 : f32
    %24 = vector.broadcast %cst_10 : f32 to vector<16x32xf32>
    %25 = arith.addf %24, %23 : vector<16x32xf32>
    %26 = arith.mulf %20, %25 : vector<16x32xf32>
    %27 = tpu.iota {dimensions = array<i32: 0>} : vector<16x32xi32>
    %c0_i32_11 = arith.constant 0 : i32
    %28 = vector.broadcast %c0_i32_11 : i32 to vector<16x32xi32>
    %29 = arith.cmpi eq, %27, %28 : vector<16x32xi32>
    %c1_i32_12 = arith.constant 1 : i32
    %30 = tpu.dynamic_rotate %26 by %c1_i32_12 dim 0 : vector<16x32xf32>, i32 -> vector<16x32xf32>
    %cst_13 = arith.constant 0.000000e+00 : f32
    %31 = vector.broadcast %cst_13 : f32 to vector<16x32xf32>
    %32 = arith.select %29, %31, %30 : vector<16x32xi1>, vector<16x32xf32>
    %c15_i32_14 = arith.constant 15 : i32
    %33 = vector.broadcast %c15_i32_14 : i32 to vector<16x32xi32>
    %34 = arith.cmpi eq, %27, %33 : vector<16x32xi32>
    %c15_i32_15 = arith.constant 15 : i32
    %35 = tpu.dynamic_rotate %26 by %c15_i32_15 dim 0 : vector<16x32xf32>, i32 -> vector<16x32xf32>
    %cst_16 = arith.constant 0.000000e+00 : f32
    %36 = vector.broadcast %cst_16 : f32 to vector<16x32xf32>
    %37 = arith.select %34, %36, %35 : vector<16x32xi1>, vector<16x32xf32>
    %38 = tpu.concatenate %32, %26, %37 in 1 : vector<16x32xf32>, vector<16x32xf32>, vector<16x32xf32> -> vector<16x96xf32>
    %39 = tpu.iota {dimensions = array<i32: 0>} : vector<8x16xi32>
    %40 = tpu.iota {dimensions = array<i32: 1>} : vector<8x16xi32>
    %c2_i32 = arith.constant 2 : i32
    %41 = vector.broadcast %c2_i32 : i32 to vector<8x16xi32>
    %42 = arith.muli %41, %39 : vector<8x16xi32>
    %43 = arith.cmpi eq, %40, %42 : vector<8x16xi32>
    %44 = arith.extui %43 : vector<8x16xi1> to vector<8x16xi32>
    %45 = arith.sitofp %44 : vector<8x16xi32> to vector<8x16xf32>
    %cst_17 = arith.constant dense<0.000000e+00> : vector<8x96xf32>
    %46 = tpu.matmul %45, %38, %cst_17 {dimension_numbers = #tpu.dot_dimension_numbers<[1], [0], [0], [1], [0, 0, 1, 1], [], []>} : vector<8x16xf32>, vector<16x96xf32>, vector<8x96xf32> -> vector<8x96xf32>
    %c24 = arith.constant 24 : index
    %c0_18 = arith.constant 0 : index
    %47 = vector.load %arg2[%c24, %c0_18] : memref<120x32xf32, #tpu.memory_space<vmem>>, vector<96x32xf32>
    %cst_19 = arith.constant dense<0.000000e+00> : vector<8x32xf32>
    %48 = tpu.matmul %46, %47, %cst_19 {dimension_numbers = #tpu.dot_dimension_numbers<[1], [0], [0], [1], [0, 0, 1, 1], [], []>} : vector<8x96xf32>, vector<96x32xf32>, vector<8x32xf32> -> vector<8x32xf32>
    %c9 = arith.constant 9 : index
    %c0_20 = arith.constant 0 : index
    %49 = vector.load %arg7[%c9, %c0_20] : memref<32x128xf32, #tpu.memory_space<vmem>>, vector<1x32xf32>
    %50 = vector.broadcast %49 : vector<1x32xf32> to vector<8x32xf32>
    %51 = arith.addf %48, %50 : vector<8x32xf32>
    %cst_21 = arith.constant 5.000000e-01 : f32
    %52 = vector.broadcast %cst_21 : f32 to vector<8x32xf32>
    %53 = arith.mulf %52, %51 : vector<8x32xf32>
    %cst_22 = arith.constant 0.707106769 : f32
    %54 = vector.broadcast %cst_22 : f32 to vector<8x32xf32>
    %55 = arith.mulf %51, %54 : vector<8x32xf32>
    %56 = math.erf %55 : vector<8x32xf32>
    %cst_23 = arith.constant 1.000000e+00 : f32
    %57 = vector.broadcast %cst_23 : f32 to vector<8x32xf32>
    %58 = arith.addf %57, %56 : vector<8x32xf32>
    %59 = arith.mulf %53, %58 : vector<8x32xf32>
    %c0_24 = arith.constant 0 : index
    %c0_25 = arith.constant 0 : index
    %60 = vector.load %arg7[%c0_24, %c0_25] : memref<32x128xf32, #tpu.memory_space<vmem>>, vector<8x32xf32>
    %61 = arith.addf %59, %60 : vector<8x32xf32>
    %c16 = arith.constant 16 : index
    %c0_26 = arith.constant 0 : index
    %62 = vector.load %arg7[%c16, %c0_26] : memref<32x128xf32, #tpu.memory_space<vmem>>, vector<1x32xf32>
    %c17 = arith.constant 17 : index
    %c0_27 = arith.constant 0 : index
    %63 = vector.load %arg7[%c17, %c0_27] : memref<32x128xf32, #tpu.memory_space<vmem>>, vector<1x32xf32>
    %cst_28 = arith.constant dense<0.000000e+00> : vector<8xf32>
    %64 = vector.multi_reduction <add>, %61, %cst_28 [1] : vector<8x32xf32> to vector<8xf32>
    %65 = vector.shape_cast %64 : vector<8xf32> to vector<8x1xf32>
    %cst_29 = arith.constant 3.200000e+01 : f32
    %66 = vector.broadcast %cst_29 : f32 to vector<8x1xf32>
    %67 = arith.divf %65, %66 : vector<8x1xf32>
    %68 = arith.mulf %61, %61 : vector<8x32xf32>
    %cst_30 = arith.constant dense<0.000000e+00> : vector<8xf32>
    %69 = vector.multi_reduction <add>, %68, %cst_30 [1] : vector<8x32xf32> to vector<8xf32>
    %70 = vector.shape_cast %69 : vector<8xf32> to vector<8x1xf32>
    %cst_31 = arith.constant 3.200000e+01 : f32
    %71 = vector.broadcast %cst_31 : f32 to vector<8x1xf32>
    %72 = arith.divf %70, %71 : vector<8x1xf32>
    %73 = vector.broadcast %67 : vector<8x1xf32> to vector<8x32xf32>
    %74 = arith.subf %61, %73 : vector<8x32xf32>
    %75 = arith.mulf %67, %67 : vector<8x1xf32>
    %76 = arith.subf %72, %75 : vector<8x1xf32>
    %cst_32 = arith.constant 9.99999974E-6 : f32
    %77 = vector.broadcast %cst_32 : f32 to vector<8x1xf32>
    %78 = arith.addf %76, %77 : vector<8x1xf32>
    %79 = math.rsqrt %78 : vector<8x1xf32>
    %80 = vector.broadcast %79 : vector<8x1xf32> to vector<8x32xf32>
    %81 = arith.mulf %74, %80 : vector<8x32xf32>
    %82 = vector.broadcast %62 : vector<1x32xf32> to vector<8x32xf32>
    %83 = arith.mulf %81, %82 : vector<8x32xf32>
    %84 = vector.broadcast %63 : vector<1x32xf32> to vector<8x32xf32>
    %85 = arith.addf %83, %84 : vector<8x32xf32>
    %c0_33 = arith.constant 0 : index
    %c0_34 = arith.constant 0 : index
    %c0_35 = arith.constant 0 : index
    %86 = vector.load %arg3[%c0_33, %c0_34, %c0_35] : memref<2x32x96xf32, #tpu.memory_space<vmem>>, vector<1x32x96xf32>
    %87 = vector.shape_cast %86 : vector<1x32x96xf32> to vector<32x96xf32>
    %cst_36 = arith.constant dense<0.000000e+00> : vector<8x96xf32>
    %88 = tpu.matmul %85, %87, %cst_36 {dimension_numbers = #tpu.dot_dimension_numbers<[1], [0], [0], [1], [0, 0, 1, 1], [], []>} : vector<8x32xf32>, vector<32x96xf32>, vector<8x96xf32> -> vector<8x96xf32>
    %c20 = arith.constant 20 : index
    %c0_37 = arith.constant 0 : index
    %89 = vector.load %arg7[%c20, %c0_37] : memref<32x128xf32, #tpu.memory_space<vmem>>, vector<1x96xf32>
    %90 = vector.broadcast %89 : vector<1x96xf32> to vector<8x96xf32>
    %91 = arith.addf %88, %90 : vector<8x96xf32>
    %92 = vector.extract_strided_slice %91 {offsets = [0, 0], sizes = [8, 8], strides = [1, 1]} : vector<8x96xf32> to vector<8x8xf32>
    %93 = vector.extract_strided_slice %91 {offsets = [0, 8], sizes = [8, 8], strides = [1, 1]} : vector<8x96xf32> to vector<8x8xf32>
    %94 = vector.extract_strided_slice %91 {offsets = [0, 16], sizes = [8, 8], strides = [1, 1]} : vector<8x96xf32> to vector<8x8xf32>
    %95 = vector.extract_strided_slice %91 {offsets = [0, 24], sizes = [8, 8], strides = [1, 1]} : vector<8x96xf32> to vector<8x8xf32>
    %96 = vector.shape_cast %92 : vector<8x8xf32> to vector<1x8x8xf32>
    %97 = vector.shape_cast %93 : vector<8x8xf32> to vector<1x8x8xf32>
    %98 = vector.shape_cast %94 : vector<8x8xf32> to vector<1x8x8xf32>
    %99 = vector.shape_cast %95 : vector<8x8xf32> to vector<1x8x8xf32>
    %100 = tpu.concatenate %96, %97, %98, %99 in 0 : vector<1x8x8xf32>, vector<1x8x8xf32>, vector<1x8x8xf32>, vector<1x8x8xf32> -> vector<4x8x8xf32>
    %101 = vector.extract_strided_slice %91 {offsets = [0, 32], sizes = [8, 8], strides = [1, 1]} : vector<8x96xf32> to vector<8x8xf32>
    %102 = vector.extract_strided_slice %91 {offsets = [0, 40], sizes = [8, 8], strides = [1, 1]} : vector<8x96xf32> to vector<8x8xf32>
    %103 = vector.extract_strided_slice %91 {offsets = [0, 48], sizes = [8, 8], strides = [1, 1]} : vector<8x96xf32> to vector<8x8xf32>
    %104 = vector.extract_strided_slice %91 {offsets = [0, 56], sizes = [8, 8], strides = [1, 1]} : vector<8x96xf32> to vector<8x8xf32>
    %105 = vector.shape_cast %101 : vector<8x8xf32> to vector<1x8x8xf32>
    %106 = vector.shape_cast %102 : vector<8x8xf32> to vector<1x8x8xf32>
    %107 = vector.shape_cast %103 : vector<8x8xf32> to vector<1x8x8xf32>
    %108 = vector.shape_cast %104 : vector<8x8xf32> to vector<1x8x8xf32>
    %109 = tpu.concatenate %105, %106, %107, %108 in 0 : vector<1x8x8xf32>, vector<1x8x8xf32>, vector<1x8x8xf32>, vector<1x8x8xf32> -> vector<4x8x8xf32>
    %110 = vector.extract_strided_slice %91 {offsets = [0, 64], sizes = [8, 8], strides = [1, 1]} : vector<8x96xf32> to vector<8x8xf32>
    %111 = vector.extract_strided_slice %91 {offsets = [0, 72], sizes = [8, 8], strides = [1, 1]} : vector<8x96xf32> to vector<8x8xf32>
    %112 = vector.extract_strided_slice %91 {offsets = [0, 80], sizes = [8, 8], strides = [1, 1]} : vector<8x96xf32> to vector<8x8xf32>
    %113 = vector.extract_strided_slice %91 {offsets = [0, 88], sizes = [8, 8], strides = [1, 1]} : vector<8x96xf32> to vector<8x8xf32>
    %114 = vector.shape_cast %110 : vector<8x8xf32> to vector<1x8x8xf32>
    %115 = vector.shape_cast %111 : vector<8x8xf32> to vector<1x8x8xf32>
    %116 = vector.shape_cast %112 : vector<8x8xf32> to vector<1x8x8xf32>
    %117 = vector.shape_cast %113 : vector<8x8xf32> to vector<1x8x8xf32>
    %118 = tpu.concatenate %114, %115, %116, %117 in 0 : vector<1x8x8xf32>, vector<1x8x8xf32>, vector<1x8x8xf32>, vector<1x8x8xf32> -> vector<4x8x8xf32>
    "tpu.trace_start"() <{level = 10 : i32, message = "hqd,hkd->hqk"}> : () -> ()
    %cst_38 = arith.constant dense<0.000000e+00> : vector<4x8x8xf32>
    %119 = tpu.matmul %100, %109, %cst_38 {dimension_numbers = #tpu.dot_dimension_numbers<[2], [2], [1], [1], [0, 0, 0, 1, 1, 1], [0], [0]>} : vector<4x8x8xf32>, vector<4x8x8xf32>, vector<4x8x8xf32> -> vector<4x8x8xf32>
    "tpu.trace_stop"() : () -> ()
    %cst_39 = arith.constant dense<0xFF800000> : vector<4x8xf32>
    %120 = vector.multi_reduction <maximumf>, %119, %cst_39 [2] : vector<4x8x8xf32> to vector<4x8xf32>
    %121 = vector.shape_cast %120 : vector<4x8xf32> to vector<4x8x1xf32>
    %122 = vector.broadcast %121 : vector<4x8x1xf32> to vector<4x8x8xf32>
    %123 = arith.subf %119, %122 : vector<4x8x8xf32>
    %124 = math.exp %123 : vector<4x8x8xf32>
    %cst_40 = arith.constant dense<0.000000e+00> : vector<4x8xf32>
    %125 = vector.multi_reduction <add>, %124, %cst_40 [2] : vector<4x8x8xf32> to vector<4x8xf32>
    %126 = vector.shape_cast %125 : vector<4x8xf32> to vector<4x8x1xf32>
    %127 = tpu.reciprocal %126 {approx = true} : vector<4x8x1xf32> -> vector<4x8x1xf32>
    %128 = vector.broadcast %127 : vector<4x8x1xf32> to vector<4x8x8xf32>
    %129 = arith.mulf %124, %128 : vector<4x8x8xf32>
    "tpu.trace_start"() <{level = 10 : i32, message = "hqk,hkd->hqd"}> : () -> ()
    %cst_41 = arith.constant dense<0.000000e+00> : vector<4x8x8xf32>
    %130 = tpu.matmul %129, %118, %cst_41 {dimension_numbers = #tpu.dot_dimension_numbers<[2], [1], [1], [2], [0, 0, 0, 1, 1, 2], [0], [0]>} : vector<4x8x8xf32>, vector<4x8x8xf32>, vector<4x8x8xf32> -> vector<4x8x8xf32>
    "tpu.trace_stop"() : () -> ()
    %131 = vector.extract_strided_slice %130 {offsets = [0, 0, 0], sizes = [1, 8, 8], strides = [1, 1, 1]} : vector<4x8x8xf32> to vector<1x8x8xf32>
    %132 = vector.shape_cast %131 : vector<1x8x8xf32> to vector<8x8xf32>
    %133 = vector.extract_strided_slice %130 {offsets = [1, 0, 0], sizes = [1, 8, 8], strides = [1, 1, 1]} : vector<4x8x8xf32> to vector<1x8x8xf32>
    %134 = vector.shape_cast %133 : vector<1x8x8xf32> to vector<8x8xf32>
    %135 = vector.extract_strided_slice %130 {offsets = [2, 0, 0], sizes = [1, 8, 8], strides = [1, 1, 1]} : vector<4x8x8xf32> to vector<1x8x8xf32>
    %136 = vector.shape_cast %135 : vector<1x8x8xf32> to vector<8x8xf32>
    %137 = vector.extract_strided_slice %130 {offsets = [3, 0, 0], sizes = [1, 8, 8], strides = [1, 1, 1]} : vector<4x8x8xf32> to vector<1x8x8xf32>
    %138 = vector.shape_cast %137 : vector<1x8x8xf32> to vector<8x8xf32>
    %139 = tpu.concatenate %132, %134, %136, %138 in 1 : vector<8x8xf32>, vector<8x8xf32>, vector<8x8xf32>, vector<8x8xf32> -> vector<8x32xf32>
    %c0_42 = arith.constant 0 : index
    %c0_43 = arith.constant 0 : index
    %c0_44 = arith.constant 0 : index
    %140 = vector.load %arg4[%c0_42, %c0_43, %c0_44] : memref<2x32x32xf32, #tpu.memory_space<vmem>>, vector<1x32x32xf32>
    %141 = vector.shape_cast %140 : vector<1x32x32xf32> to vector<32x32xf32>
    %cst_45 = arith.constant dense<0.000000e+00> : vector<8x32xf32>
    %142 = tpu.matmul %139, %141, %cst_45 {dimension_numbers = #tpu.dot_dimension_numbers<[1], [0], [0], [1], [0, 0, 1, 1], [], []>} : vector<8x32xf32>, vector<32x32xf32>, vector<8x32xf32> -> vector<8x32xf32>
    %143 = arith.addf %61, %142 : vector<8x32xf32>
    %c21 = arith.constant 21 : index
    %c0_46 = arith.constant 0 : index
    %144 = vector.load %arg7[%c21, %c0_46] : memref<32x128xf32, #tpu.memory_space<vmem>>, vector<1x32xf32>
    %145 = vector.broadcast %144 : vector<1x32xf32> to vector<8x32xf32>
    %146 = arith.addf %143, %145 : vector<8x32xf32>
    %c18 = arith.constant 18 : index
    %c0_47 = arith.constant 0 : index
    %147 = vector.load %arg7[%c18, %c0_47] : memref<32x128xf32, #tpu.memory_space<vmem>>, vector<1x32xf32>
    %c19 = arith.constant 19 : index
    %c0_48 = arith.constant 0 : index
    %148 = vector.load %arg7[%c19, %c0_48] : memref<32x128xf32, #tpu.memory_space<vmem>>, vector<1x32xf32>
    %cst_49 = arith.constant dense<0.000000e+00> : vector<8xf32>
    %149 = vector.multi_reduction <add>, %146, %cst_49 [1] : vector<8x32xf32> to vector<8xf32>
    %150 = vector.shape_cast %149 : vector<8xf32> to vector<8x1xf32>
    %cst_50 = arith.constant 3.200000e+01 : f32
    %151 = vector.broadcast %cst_50 : f32 to vector<8x1xf32>
    %152 = arith.divf %150, %151 : vector<8x1xf32>
    %153 = arith.mulf %146, %146 : vector<8x32xf32>
    %cst_51 = arith.constant dense<0.000000e+00> : vector<8xf32>
    %154 = vector.multi_reduction <add>, %153, %cst_51 [1] : vector<8x32xf32> to vector<8xf32>
    %155 = vector.shape_cast %154 : vector<8xf32> to vector<8x1xf32>
    %cst_52 = arith.constant 3.200000e+01 : f32
    %156 = vector.broadcast %cst_52 : f32 to vector<8x1xf32>
    %157 = arith.divf %155, %156 : vector<8x1xf32>
    %158 = vector.broadcast %152 : vector<8x1xf32> to vector<8x32xf32>
    %159 = arith.subf %146, %158 : vector<8x32xf32>
    %160 = arith.mulf %152, %152 : vector<8x1xf32>
    %161 = arith.subf %157, %160 : vector<8x1xf32>
    %cst_53 = arith.constant 9.99999974E-6 : f32
    %162 = vector.broadcast %cst_53 : f32 to vector<8x1xf32>
    %163 = arith.addf %161, %162 : vector<8x1xf32>
    %164 = math.rsqrt %163 : vector<8x1xf32>
    %165 = vector.broadcast %164 : vector<8x1xf32> to vector<8x32xf32>
    %166 = arith.mulf %159, %165 : vector<8x32xf32>
    %167 = vector.broadcast %147 : vector<1x32xf32> to vector<8x32xf32>
    %168 = arith.mulf %166, %167 : vector<8x32xf32>
    %169 = vector.broadcast %148 : vector<1x32xf32> to vector<8x32xf32>
    %170 = arith.addf %168, %169 : vector<8x32xf32>
    %c0_54 = arith.constant 0 : index
    %c0_55 = arith.constant 0 : index
    %c0_56 = arith.constant 0 : index
    %171 = vector.load %arg5[%c0_54, %c0_55, %c0_56] : memref<2x32x64xf32, #tpu.memory_space<vmem>>, vector<1x32x64xf32>
    %172 = vector.shape_cast %171 : vector<1x32x64xf32> to vector<32x64xf32>
    %cst_57 = arith.constant dense<0.000000e+00> : vector<8x64xf32>
    %173 = tpu.matmul %170, %172, %cst_57 {dimension_numbers = #tpu.dot_dimension_numbers<[1], [0], [0], [1], [0, 0, 1, 1], [], []>} : vector<8x32xf32>, vector<32x64xf32>, vector<8x64xf32> -> vector<8x64xf32>
    %c22 = arith.constant 22 : index
    %c0_58 = arith.constant 0 : index
    %174 = vector.load %arg7[%c22, %c0_58] : memref<32x128xf32, #tpu.memory_space<vmem>>, vector<1x64xf32>
    %175 = vector.broadcast %174 : vector<1x64xf32> to vector<8x64xf32>
    %176 = arith.addf %173, %175 : vector<8x64xf32>
    %cst_59 = arith.constant 5.000000e-01 : f32
    %177 = vector.broadcast %cst_59 : f32 to vector<8x64xf32>
    %178 = arith.mulf %177, %176 : vector<8x64xf32>
    %cst_60 = arith.constant 0.707106769 : f32
    %179 = vector.broadcast %cst_60 : f32 to vector<8x64xf32>
    %180 = arith.mulf %176, %179 : vector<8x64xf32>
    %181 = math.erf %180 : vector<8x64xf32>
    %cst_61 = arith.constant 1.000000e+00 : f32
    %182 = vector.broadcast %cst_61 : f32 to vector<8x64xf32>
    %183 = arith.addf %182, %181 : vector<8x64xf32>
    %184 = arith.mulf %178, %183 : vector<8x64xf32>
    %c0_62 = arith.constant 0 : index
    %c0_63 = arith.constant 0 : index
    %c0_64 = arith.constant 0 : index
    %185 = vector.load %arg6[%c0_62, %c0_63, %c0_64] : memref<2x64x32xf32, #tpu.memory_space<vmem>>, vector<1x64x32xf32>
    %186 = vector.shape_cast %185 : vector<1x64x32xf32> to vector<64x32xf32>
    %cst_65 = arith.constant dense<0.000000e+00> : vector<8x32xf32>
    %187 = tpu.matmul %184, %186, %cst_65 {dimension_numbers = #tpu.dot_dimension_numbers<[1], [0], [0], [1], [0, 0, 1, 1], [], []>} : vector<8x64xf32>, vector<64x32xf32>, vector<8x32xf32> -> vector<8x32xf32>
    %188 = arith.addf %146, %187 : vector<8x32xf32>
    %c23 = arith.constant 23 : index
    %c0_66 = arith.constant 0 : index
    %189 = vector.load %arg7[%c23, %c0_66] : memref<32x128xf32, #tpu.memory_space<vmem>>, vector<1x32xf32>
    %190 = vector.broadcast %189 : vector<1x32xf32> to vector<8x32xf32>
    %191 = arith.addf %188, %190 : vector<8x32xf32>
    %c24_67 = arith.constant 24 : index
    %c0_68 = arith.constant 0 : index
    %192 = vector.load %arg7[%c24_67, %c0_68] : memref<32x128xf32, #tpu.memory_space<vmem>>, vector<1x32xf32>
    %c25 = arith.constant 25 : index
    %c0_69 = arith.constant 0 : index
    %193 = vector.load %arg7[%c25, %c0_69] : memref<32x128xf32, #tpu.memory_space<vmem>>, vector<1x32xf32>
    %cst_70 = arith.constant dense<0.000000e+00> : vector<8xf32>
    %194 = vector.multi_reduction <add>, %191, %cst_70 [1] : vector<8x32xf32> to vector<8xf32>
    %195 = vector.shape_cast %194 : vector<8xf32> to vector<8x1xf32>
    %cst_71 = arith.constant 3.200000e+01 : f32
    %196 = vector.broadcast %cst_71 : f32 to vector<8x1xf32>
    %197 = arith.divf %195, %196 : vector<8x1xf32>
    %198 = arith.mulf %191, %191 : vector<8x32xf32>
    %cst_72 = arith.constant dense<0.000000e+00> : vector<8xf32>
    %199 = vector.multi_reduction <add>, %198, %cst_72 [1] : vector<8x32xf32> to vector<8xf32>
    %200 = vector.shape_cast %199 : vector<8xf32> to vector<8x1xf32>
    %cst_73 = arith.constant 3.200000e+01 : f32
    %201 = vector.broadcast %cst_73 : f32 to vector<8x1xf32>
    %202 = arith.divf %200, %201 : vector<8x1xf32>
    %203 = vector.broadcast %197 : vector<8x1xf32> to vector<8x32xf32>
    %204 = arith.subf %191, %203 : vector<8x32xf32>
    %205 = arith.mulf %197, %197 : vector<8x1xf32>
    %206 = arith.subf %202, %205 : vector<8x1xf32>
    %cst_74 = arith.constant 9.99999974E-6 : f32
    %207 = vector.broadcast %cst_74 : f32 to vector<8x1xf32>
    %208 = arith.addf %206, %207 : vector<8x1xf32>
    %209 = math.rsqrt %208 : vector<8x1xf32>
    %210 = vector.broadcast %209 : vector<8x1xf32> to vector<8x32xf32>
    %211 = arith.mulf %204, %210 : vector<8x32xf32>
    %212 = vector.broadcast %192 : vector<1x32xf32> to vector<8x32xf32>
    %213 = arith.mulf %211, %212 : vector<8x32xf32>
    %214 = vector.broadcast %193 : vector<1x32xf32> to vector<8x32xf32>
    %215 = arith.addf %213, %214 : vector<8x32xf32>
    %c1 = arith.constant 1 : index
    %c0_75 = arith.constant 0 : index
    %c0_76 = arith.constant 0 : index
    %216 = vector.load %arg3[%c1, %c0_75, %c0_76] : memref<2x32x96xf32, #tpu.memory_space<vmem>>, vector<1x32x96xf32>
    %217 = vector.shape_cast %216 : vector<1x32x96xf32> to vector<32x96xf32>
    %cst_77 = arith.constant dense<0.000000e+00> : vector<8x96xf32>
    %218 = tpu.matmul %215, %217, %cst_77 {dimension_numbers = #tpu.dot_dimension_numbers<[1], [0], [0], [1], [0, 0, 1, 1], [], []>} : vector<8x32xf32>, vector<32x96xf32>, vector<8x96xf32> -> vector<8x96xf32>
    %c28 = arith.constant 28 : index
    %c0_78 = arith.constant 0 : index
    %219 = vector.load %arg7[%c28, %c0_78] : memref<32x128xf32, #tpu.memory_space<vmem>>, vector<1x96xf32>
    %220 = vector.broadcast %219 : vector<1x96xf32> to vector<8x96xf32>
    %221 = arith.addf %218, %220 : vector<8x96xf32>
    %222 = vector.extract_strided_slice %221 {offsets = [0, 0], sizes = [8, 8], strides = [1, 1]} : vector<8x96xf32> to vector<8x8xf32>
    %223 = vector.extract_strided_slice %221 {offsets = [0, 8], sizes = [8, 8], strides = [1, 1]} : vector<8x96xf32> to vector<8x8xf32>
    %224 = vector.extract_strided_slice %221 {offsets = [0, 16], sizes = [8, 8], strides = [1, 1]} : vector<8x96xf32> to vector<8x8xf32>
    %225 = vector.extract_strided_slice %221 {offsets = [0, 24], sizes = [8, 8], strides = [1, 1]} : vector<8x96xf32> to vector<8x8xf32>
    %226 = vector.shape_cast %222 : vector<8x8xf32> to vector<1x8x8xf32>
    %227 = vector.shape_cast %223 : vector<8x8xf32> to vector<1x8x8xf32>
    %228 = vector.shape_cast %224 : vector<8x8xf32> to vector<1x8x8xf32>
    %229 = vector.shape_cast %225 : vector<8x8xf32> to vector<1x8x8xf32>
    %230 = tpu.concatenate %226, %227, %228, %229 in 0 : vector<1x8x8xf32>, vector<1x8x8xf32>, vector<1x8x8xf32>, vector<1x8x8xf32> -> vector<4x8x8xf32>
    %231 = vector.extract_strided_slice %221 {offsets = [0, 32], sizes = [8, 8], strides = [1, 1]} : vector<8x96xf32> to vector<8x8xf32>
    %232 = vector.extract_strided_slice %221 {offsets = [0, 40], sizes = [8, 8], strides = [1, 1]} : vector<8x96xf32> to vector<8x8xf32>
    %233 = vector.extract_strided_slice %221 {offsets = [0, 48], sizes = [8, 8], strides = [1, 1]} : vector<8x96xf32> to vector<8x8xf32>
    %234 = vector.extract_strided_slice %221 {offsets = [0, 56], sizes = [8, 8], strides = [1, 1]} : vector<8x96xf32> to vector<8x8xf32>
    %235 = vector.shape_cast %231 : vector<8x8xf32> to vector<1x8x8xf32>
    %236 = vector.shape_cast %232 : vector<8x8xf32> to vector<1x8x8xf32>
    %237 = vector.shape_cast %233 : vector<8x8xf32> to vector<1x8x8xf32>
    %238 = vector.shape_cast %234 : vector<8x8xf32> to vector<1x8x8xf32>
    %239 = tpu.concatenate %235, %236, %237, %238 in 0 : vector<1x8x8xf32>, vector<1x8x8xf32>, vector<1x8x8xf32>, vector<1x8x8xf32> -> vector<4x8x8xf32>
    %240 = vector.extract_strided_slice %221 {offsets = [0, 64], sizes = [8, 8], strides = [1, 1]} : vector<8x96xf32> to vector<8x8xf32>
    %241 = vector.extract_strided_slice %221 {offsets = [0, 72], sizes = [8, 8], strides = [1, 1]} : vector<8x96xf32> to vector<8x8xf32>
    %242 = vector.extract_strided_slice %221 {offsets = [0, 80], sizes = [8, 8], strides = [1, 1]} : vector<8x96xf32> to vector<8x8xf32>
    %243 = vector.extract_strided_slice %221 {offsets = [0, 88], sizes = [8, 8], strides = [1, 1]} : vector<8x96xf32> to vector<8x8xf32>
    %244 = vector.shape_cast %240 : vector<8x8xf32> to vector<1x8x8xf32>
    %245 = vector.shape_cast %241 : vector<8x8xf32> to vector<1x8x8xf32>
    %246 = vector.shape_cast %242 : vector<8x8xf32> to vector<1x8x8xf32>
    %247 = vector.shape_cast %243 : vector<8x8xf32> to vector<1x8x8xf32>
    %248 = tpu.concatenate %244, %245, %246, %247 in 0 : vector<1x8x8xf32>, vector<1x8x8xf32>, vector<1x8x8xf32>, vector<1x8x8xf32> -> vector<4x8x8xf32>
    "tpu.trace_start"() <{level = 10 : i32, message = "hqd,hkd->hqk"}> : () -> ()
    %cst_79 = arith.constant dense<0.000000e+00> : vector<4x8x8xf32>
    %249 = tpu.matmul %230, %239, %cst_79 {dimension_numbers = #tpu.dot_dimension_numbers<[2], [2], [1], [1], [0, 0, 0, 1, 1, 1], [0], [0]>} : vector<4x8x8xf32>, vector<4x8x8xf32>, vector<4x8x8xf32> -> vector<4x8x8xf32>
    "tpu.trace_stop"() : () -> ()
    %cst_80 = arith.constant dense<0xFF800000> : vector<4x8xf32>
    %250 = vector.multi_reduction <maximumf>, %249, %cst_80 [2] : vector<4x8x8xf32> to vector<4x8xf32>
    %251 = vector.shape_cast %250 : vector<4x8xf32> to vector<4x8x1xf32>
    %252 = vector.broadcast %251 : vector<4x8x1xf32> to vector<4x8x8xf32>
    %253 = arith.subf %249, %252 : vector<4x8x8xf32>
    %254 = math.exp %253 : vector<4x8x8xf32>
    %cst_81 = arith.constant dense<0.000000e+00> : vector<4x8xf32>
    %255 = vector.multi_reduction <add>, %254, %cst_81 [2] : vector<4x8x8xf32> to vector<4x8xf32>
    %256 = vector.shape_cast %255 : vector<4x8xf32> to vector<4x8x1xf32>
    %257 = tpu.reciprocal %256 {approx = true} : vector<4x8x1xf32> -> vector<4x8x1xf32>
    %258 = vector.broadcast %257 : vector<4x8x1xf32> to vector<4x8x8xf32>
    %259 = arith.mulf %254, %258 : vector<4x8x8xf32>
    "tpu.trace_start"() <{level = 10 : i32, message = "hqk,hkd->hqd"}> : () -> ()
    %cst_82 = arith.constant dense<0.000000e+00> : vector<4x8x8xf32>
    %260 = tpu.matmul %259, %248, %cst_82 {dimension_numbers = #tpu.dot_dimension_numbers<[2], [1], [1], [2], [0, 0, 0, 1, 1, 2], [0], [0]>} : vector<4x8x8xf32>, vector<4x8x8xf32>, vector<4x8x8xf32> -> vector<4x8x8xf32>
    "tpu.trace_stop"() : () -> ()
    %261 = vector.extract_strided_slice %260 {offsets = [0, 0, 0], sizes = [1, 8, 8], strides = [1, 1, 1]} : vector<4x8x8xf32> to vector<1x8x8xf32>
    %262 = vector.shape_cast %261 : vector<1x8x8xf32> to vector<8x8xf32>
    %263 = vector.extract_strided_slice %260 {offsets = [1, 0, 0], sizes = [1, 8, 8], strides = [1, 1, 1]} : vector<4x8x8xf32> to vector<1x8x8xf32>
    %264 = vector.shape_cast %263 : vector<1x8x8xf32> to vector<8x8xf32>
    %265 = vector.extract_strided_slice %260 {offsets = [2, 0, 0], sizes = [1, 8, 8], strides = [1, 1, 1]} : vector<4x8x8xf32> to vector<1x8x8xf32>
    %266 = vector.shape_cast %265 : vector<1x8x8xf32> to vector<8x8xf32>
    %267 = vector.extract_strided_slice %260 {offsets = [3, 0, 0], sizes = [1, 8, 8], strides = [1, 1, 1]} : vector<4x8x8xf32> to vector<1x8x8xf32>
    %268 = vector.shape_cast %267 : vector<1x8x8xf32> to vector<8x8xf32>
    %269 = tpu.concatenate %262, %264, %266, %268 in 1 : vector<8x8xf32>, vector<8x8xf32>, vector<8x8xf32>, vector<8x8xf32> -> vector<8x32xf32>
    %c1_83 = arith.constant 1 : index
    %c0_84 = arith.constant 0 : index
    %c0_85 = arith.constant 0 : index
    %270 = vector.load %arg4[%c1_83, %c0_84, %c0_85] : memref<2x32x32xf32, #tpu.memory_space<vmem>>, vector<1x32x32xf32>
    %271 = vector.shape_cast %270 : vector<1x32x32xf32> to vector<32x32xf32>
    %cst_86 = arith.constant dense<0.000000e+00> : vector<8x32xf32>
    %272 = tpu.matmul %269, %271, %cst_86 {dimension_numbers = #tpu.dot_dimension_numbers<[1], [0], [0], [1], [0, 0, 1, 1], [], []>} : vector<8x32xf32>, vector<32x32xf32>, vector<8x32xf32> -> vector<8x32xf32>
    %273 = arith.addf %191, %272 : vector<8x32xf32>
    %c29 = arith.constant 29 : index
    %c0_87 = arith.constant 0 : index
    %274 = vector.load %arg7[%c29, %c0_87] : memref<32x128xf32, #tpu.memory_space<vmem>>, vector<1x32xf32>
    %275 = vector.broadcast %274 : vector<1x32xf32> to vector<8x32xf32>
    %276 = arith.addf %273, %275 : vector<8x32xf32>
    %c26 = arith.constant 26 : index
    %c0_88 = arith.constant 0 : index
    %277 = vector.load %arg7[%c26, %c0_88] : memref<32x128xf32, #tpu.memory_space<vmem>>, vector<1x32xf32>
    %c27 = arith.constant 27 : index
    %c0_89 = arith.constant 0 : index
    %278 = vector.load %arg7[%c27, %c0_89] : memref<32x128xf32, #tpu.memory_space<vmem>>, vector<1x32xf32>
    %cst_90 = arith.constant dense<0.000000e+00> : vector<8xf32>
    %279 = vector.multi_reduction <add>, %276, %cst_90 [1] : vector<8x32xf32> to vector<8xf32>
    %280 = vector.shape_cast %279 : vector<8xf32> to vector<8x1xf32>
    %cst_91 = arith.constant 3.200000e+01 : f32
    %281 = vector.broadcast %cst_91 : f32 to vector<8x1xf32>
    %282 = arith.divf %280, %281 : vector<8x1xf32>
    %283 = arith.mulf %276, %276 : vector<8x32xf32>
    %cst_92 = arith.constant dense<0.000000e+00> : vector<8xf32>
    %284 = vector.multi_reduction <add>, %283, %cst_92 [1] : vector<8x32xf32> to vector<8xf32>
    %285 = vector.shape_cast %284 : vector<8xf32> to vector<8x1xf32>
    %cst_93 = arith.constant 3.200000e+01 : f32
    %286 = vector.broadcast %cst_93 : f32 to vector<8x1xf32>
    %287 = arith.divf %285, %286 : vector<8x1xf32>
    %288 = vector.broadcast %282 : vector<8x1xf32> to vector<8x32xf32>
    %289 = arith.subf %276, %288 : vector<8x32xf32>
    %290 = arith.mulf %282, %282 : vector<8x1xf32>
    %291 = arith.subf %287, %290 : vector<8x1xf32>
    %cst_94 = arith.constant 9.99999974E-6 : f32
    %292 = vector.broadcast %cst_94 : f32 to vector<8x1xf32>
    %293 = arith.addf %291, %292 : vector<8x1xf32>
    %294 = math.rsqrt %293 : vector<8x1xf32>
    %295 = vector.broadcast %294 : vector<8x1xf32> to vector<8x32xf32>
    %296 = arith.mulf %289, %295 : vector<8x32xf32>
    %297 = vector.broadcast %277 : vector<1x32xf32> to vector<8x32xf32>
    %298 = arith.mulf %296, %297 : vector<8x32xf32>
    %299 = vector.broadcast %278 : vector<1x32xf32> to vector<8x32xf32>
    %300 = arith.addf %298, %299 : vector<8x32xf32>
    %c1_95 = arith.constant 1 : index
    %c0_96 = arith.constant 0 : index
    %c0_97 = arith.constant 0 : index
    %301 = vector.load %arg5[%c1_95, %c0_96, %c0_97] : memref<2x32x64xf32, #tpu.memory_space<vmem>>, vector<1x32x64xf32>
    %302 = vector.shape_cast %301 : vector<1x32x64xf32> to vector<32x64xf32>
    %cst_98 = arith.constant dense<0.000000e+00> : vector<8x64xf32>
    %303 = tpu.matmul %300, %302, %cst_98 {dimension_numbers = #tpu.dot_dimension_numbers<[1], [0], [0], [1], [0, 0, 1, 1], [], []>} : vector<8x32xf32>, vector<32x64xf32>, vector<8x64xf32> -> vector<8x64xf32>
    %c30 = arith.constant 30 : index
    %c0_99 = arith.constant 0 : index
    %304 = vector.load %arg7[%c30, %c0_99] : memref<32x128xf32, #tpu.memory_space<vmem>>, vector<1x64xf32>
    %305 = vector.broadcast %304 : vector<1x64xf32> to vector<8x64xf32>
    %306 = arith.addf %303, %305 : vector<8x64xf32>
    %cst_100 = arith.constant 5.000000e-01 : f32
    %307 = vector.broadcast %cst_100 : f32 to vector<8x64xf32>
    %308 = arith.mulf %307, %306 : vector<8x64xf32>
    %cst_101 = arith.constant 0.707106769 : f32
    %309 = vector.broadcast %cst_101 : f32 to vector<8x64xf32>
    %310 = arith.mulf %306, %309 : vector<8x64xf32>
    %311 = math.erf %310 : vector<8x64xf32>
    %cst_102 = arith.constant 1.000000e+00 : f32
    %312 = vector.broadcast %cst_102 : f32 to vector<8x64xf32>
    %313 = arith.addf %312, %311 : vector<8x64xf32>
    %314 = arith.mulf %308, %313 : vector<8x64xf32>
    %c1_103 = arith.constant 1 : index
    %c0_104 = arith.constant 0 : index
    %c0_105 = arith.constant 0 : index
    %315 = vector.load %arg6[%c1_103, %c0_104, %c0_105] : memref<2x64x32xf32, #tpu.memory_space<vmem>>, vector<1x64x32xf32>
    %316 = vector.shape_cast %315 : vector<1x64x32xf32> to vector<64x32xf32>
    %cst_106 = arith.constant dense<0.000000e+00> : vector<8x32xf32>
    %317 = tpu.matmul %314, %316, %cst_106 {dimension_numbers = #tpu.dot_dimension_numbers<[1], [0], [0], [1], [0, 0, 1, 1], [], []>} : vector<8x64xf32>, vector<64x32xf32>, vector<8x32xf32> -> vector<8x32xf32>
    %318 = arith.addf %276, %317 : vector<8x32xf32>
    %c31 = arith.constant 31 : index
    %c0_107 = arith.constant 0 : index
    %319 = vector.load %arg7[%c31, %c0_107] : memref<32x128xf32, #tpu.memory_space<vmem>>, vector<1x32xf32>
    %320 = vector.broadcast %319 : vector<1x32xf32> to vector<8x32xf32>
    %321 = arith.addf %318, %320 : vector<8x32xf32>
    %c10 = arith.constant 10 : index
    %c0_108 = arith.constant 0 : index
    %322 = vector.load %arg7[%c10, %c0_108] : memref<32x128xf32, #tpu.memory_space<vmem>>, vector<1x32xf32>
    %c11 = arith.constant 11 : index
    %c0_109 = arith.constant 0 : index
    %323 = vector.load %arg7[%c11, %c0_109] : memref<32x128xf32, #tpu.memory_space<vmem>>, vector<1x32xf32>
    %cst_110 = arith.constant dense<0.000000e+00> : vector<8xf32>
    %324 = vector.multi_reduction <add>, %321, %cst_110 [1] : vector<8x32xf32> to vector<8xf32>
    %325 = vector.shape_cast %324 : vector<8xf32> to vector<8x1xf32>
    %cst_111 = arith.constant 3.200000e+01 : f32
    %326 = vector.broadcast %cst_111 : f32 to vector<8x1xf32>
    %327 = arith.divf %325, %326 : vector<8x1xf32>
    %328 = arith.mulf %321, %321 : vector<8x32xf32>
    %cst_112 = arith.constant dense<0.000000e+00> : vector<8xf32>
    %329 = vector.multi_reduction <add>, %328, %cst_112 [1] : vector<8x32xf32> to vector<8xf32>
    %330 = vector.shape_cast %329 : vector<8xf32> to vector<8x1xf32>
    %cst_113 = arith.constant 3.200000e+01 : f32
    %331 = vector.broadcast %cst_113 : f32 to vector<8x1xf32>
    %332 = arith.divf %330, %331 : vector<8x1xf32>
    %333 = vector.broadcast %327 : vector<8x1xf32> to vector<8x32xf32>
    %334 = arith.subf %321, %333 : vector<8x32xf32>
    %335 = arith.mulf %327, %327 : vector<8x1xf32>
    %336 = arith.subf %332, %335 : vector<8x1xf32>
    %cst_114 = arith.constant 9.99999974E-6 : f32
    %337 = vector.broadcast %cst_114 : f32 to vector<8x1xf32>
    %338 = arith.addf %336, %337 : vector<8x1xf32>
    %339 = math.rsqrt %338 : vector<8x1xf32>
    %340 = vector.broadcast %339 : vector<8x1xf32> to vector<8x32xf32>
    %341 = arith.mulf %334, %340 : vector<8x32xf32>
    %342 = vector.broadcast %322 : vector<1x32xf32> to vector<8x32xf32>
    %343 = arith.mulf %341, %342 : vector<8x32xf32>
    %344 = vector.broadcast %323 : vector<1x32xf32> to vector<8x32xf32>
    %345 = arith.addf %343, %344 : vector<8x32xf32>
    %cst_115 = arith.constant dense<0.000000e+00> : vector<32xf32>
    %346 = vector.multi_reduction <add>, %345, %cst_115 [0] : vector<8x32xf32> to vector<32xf32>
    %347 = vector.shape_cast %346 : vector<32xf32> to vector<1x32xf32>
    %cst_116 = arith.constant 8.000000e+00 : f32
    %348 = vector.broadcast %cst_116 : f32 to vector<1x32xf32>
    %349 = arith.divf %347, %348 : vector<1x32xf32>
    %c0_117 = arith.constant 0 : index
    %c0_118 = arith.constant 0 : index
    %350 = vector.load %arg8[%c0_117, %c0_118] : memref<32x10xf32, #tpu.memory_space<vmem>>, vector<32x10xf32>
    %cst_119 = arith.constant dense<0.000000e+00> : vector<1x10xf32>
    %351 = tpu.matmul %349, %350, %cst_119 {dimension_numbers = #tpu.dot_dimension_numbers<[1], [0], [0], [1], [0, 0, 1, 1], [], []>} : vector<1x32xf32>, vector<32x10xf32>, vector<1x10xf32> -> vector<1x10xf32>
    %c12 = arith.constant 12 : index
    %c0_120 = arith.constant 0 : index
    %352 = vector.load %arg7[%c12, %c0_120] : memref<32x128xf32, #tpu.memory_space<vmem>>, vector<1x10xf32>
    %353 = arith.addf %351, %352 : vector<1x10xf32>
    %354 = vector.shape_cast %353 : vector<1x10xf32> to vector<1x1x10xf32>
    %c0_121 = arith.constant 0 : index
    %c0_122 = arith.constant 0 : index
    %c0_123 = arith.constant 0 : index
    %355 = vector.load %arg9[%c0_121, %c0_122, %c0_123] : memref<1x1x10xf32, #tpu.memory_space<vmem>>, vector<1x1x10xf32>
    tpu.vector_store %arg9[%c0_121, %c0_122, %c0_123], %354 {strides = array<i32>} : memref<1x1x10xf32, #tpu.memory_space<vmem>>, vector<1x1x10xf32>,
    return
  }
  func.func @transform_0(%arg0: i32) -> (i32, i32, i32) {
    %c0_i32 = arith.constant 0 : i32
    %c0_i32_0 = arith.constant 0 : i32
    %c0_i32_1 = arith.constant 0 : i32
    return %arg0, %c0_i32, %c0_i32_0 : i32, i32, i32
  }
  func.func @transform_1(%arg0: i32) -> (i32, i32) {
    %c0_i32 = arith.constant 0 : i32
    %c0_i32_0 = arith.constant 0 : i32
    %c0_i32_1 = arith.constant 0 : i32
    return %c0_i32, %c0_i32_0 : i32, i32
  }
  func.func @transform_2(%arg0: i32) -> (i32, i32, i32) {
    %c0_i32 = arith.constant 0 : i32
    %c0_i32_0 = arith.constant 0 : i32
    %c0_i32_1 = arith.constant 0 : i32
    %c0_i32_2 = arith.constant 0 : i32
    return %c0_i32, %c0_i32_0, %c0_i32_1 : i32, i32, i32
  }
  func.func @transform_3(%arg0: i32) -> (i32, i32, i32) {
    %c0_i32 = arith.constant 0 : i32
    %c0_i32_0 = arith.constant 0 : i32
    %c0_i32_1 = arith.constant 0 : i32
    %c0_i32_2 = arith.constant 0 : i32
    return %c0_i32, %c0_i32_0, %c0_i32_1 : i32, i32, i32
  }
  func.func @transform_4(%arg0: i32) -> (i32, i32, i32) {
    %c0_i32 = arith.constant 0 : i32
    %c0_i32_0 = arith.constant 0 : i32
    %c0_i32_1 = arith.constant 0 : i32
    %c0_i32_2 = arith.constant 0 : i32
    return %c0_i32, %c0_i32_0, %c0_i32_1 : i32, i32, i32
  }
  func.func @transform_5(%arg0: i32) -> (i32, i32, i32) {
    %c0_i32 = arith.constant 0 : i32
    %c0_i32_0 = arith.constant 0 : i32
    %c0_i32_1 = arith.constant 0 : i32
    %c0_i32_2 = arith.constant 0 : i32
    return %c0_i32, %c0_i32_0, %c0_i32_1 : i32, i32, i32
  }
  func.func @transform_6(%arg0: i32) -> (i32, i32) {
    %c0_i32 = arith.constant 0 : i32
    %c0_i32_0 = arith.constant 0 : i32
    %c0_i32_1 = arith.constant 0 : i32
    return %c0_i32, %c0_i32_0 : i32, i32
  }
  func.func @transform_7(%arg0: i32) -> (i32, i32) {
    %c0_i32 = arith.constant 0 : i32
    %c0_i32_0 = arith.constant 0 : i32
    %c0_i32_1 = arith.constant 0 : i32
    return %c0_i32, %c0_i32_0 : i32, i32
  }
  func.func @transform_8(%arg0: i32) -> (i32, i32, i32) {
    %c0_i32 = arith.constant 0 : i32
    %c0_i32_0 = arith.constant 0 : i32
    %c0_i32_1 = arith.constant 0 : i32
    return %arg0, %c0_i32, %c0_i32_0 : i32, i32, i32
  }
}

</mosaic_0001>

<bundles_post_ra>
// kernel: whisper_classifier_forward.1
= control target key start
LH: loop header
LB: loop body
LE: loop exit
PB: predicated region body
PF: predicated region fallthrough
CT: control target
= control target key end

     0   :  { %13 = vsyncpa [#allocation3], 0  ;;  %s4381_s0 = inlined_call_operand.vmem [shape: f32[2,16,8], index: 0, kind: input, shape index: {}]   ;;  %s4382_s1 = inlined_call_operand.vmem [shape: f32[120,32], index: 1, kind: input, shape index: {}]   ;;  %s4383_s2 = inlined_call_operand.vmem [shape: f32[2,32,96], index: 2, kind: input, shape index: {}]   ;;  %s4384_s3 = inlined_call_operand.vmem [shape: f32[2,32,32], index: 3, kind: input, shape index: {}]   ;;  %s4385_s4 = inlined_call_operand.vmem [shape: f32[2,32,64], index: 4, kind: input, shape index: {}]   ;;  %s4386_s5 = inlined_call_operand.vmem [shape: f32[2,64,32], index: 5, kind: input, shape index: {}]   ;;  %s4387_s6 = inlined_call_operand.vmem [shape: f32[32,128], index: 6, kind: input, shape index: {}]   ;;  %s4388_s7 = inlined_call_operand.vmem [shape: f32[32,10], index: 7, kind: input, shape index: {}]   ;;  %s4389_s8 = inlined_call_operand.hbm [shape: f32[2,1,10], index: 8, kind: output, shape index: {}]  }
   0x1   :  { %15 = vsyncpa [#allocation3 + $0x1], 0  ;;  %s3744_s27 = smov 0   ;;  %s3746_s28 = smov 0  }
   0x2   :  { %s3748_s29 = smov 0   ;;  %s3750_s30 = smov 0  }
   0x3 LB: > { %s3765_s9 = sadd.s32 4294967295, %s3684_s30   ;;  %s2986_s10 = sadd.s32 4294967294, %s3684_s30   ;;  %s3684_s30 = sphi %s3750_s30, %s4403_s30   ;;  %s3680_s29 = sphi %s3748_s29, %s4402_s29   ;;  %s3676_s28 = sphi %s3746_s28, %s4401_s28   ;;  %s3672_s27 = sphi %s3744_s27, %s4400_s27  }
   0x4   : > { %s3769_s11 = sadd.s32 1, %s3684_s30   ;;  %s201_s12 = sadd.s32 1, %s3680_s29 }
   0x5   : > { %s198_s13 = ssub.s32 %s3684_s30, %s3769_s11  ;;  %p211_p0 = scmp.ne.s32.totalorder %s3680_s29, %s3676_s28 }
   0x6   : > { %p199_p1 = scmp.eq.s32.totalorder %s198_s13, 0  ;;  %p212_p2 = scmp.eq.s32.totalorder %s3765_s9, 1 }
   0x7   : > { %p217_p3 = scmp.ne.s32.totalorder %s3676_s28, %s3672_s27  ;;  %p218_p4 = scmp.eq.s32.totalorder %s2986_s10, 1 }
   0x8   : > { %s3780_s14 = scalar_select %p199_p1, %s3680_s29, %s201_s12  }
   0x9   : > { %p3782_p5 = por %p212_p2, %p211_p0  ;;  %p3786_p6 = por %p218_p4, %p217_p3 }
   0xa   : > { %p2989_p7 = scmp.ge.s32.totalorder %s3684_s30, 1  ;;  %p265_p8 = scmp.lt.s32.totalorder %s3684_s30, 3 }
   0xc   : > { %p266_p9 = pnand %p2989_p7, %p265_p8 }
   0xd   : > { %p298_p10 = scmp.lt.s32.totalorder (!%p266_p9), %s3765_s9, 1  ;;  %v305_v0 = vlaneseq (!%p266_p9)  ;;  %v348_v1 = vld [vmem:[%s4382_s1] sm:$0xff] (!%p266_p9)  ;;  %v349_v2 = vld [vmem:[%s4382_s1 + $0x8] sm:$0xff] (!%p266_p9)  ;;  %v350_v5 = vld [vmem:[%s4382_s1 + $0x10] sm:$0xff] (!%p266_p9)  ;;  %s3686_s12 = smov (!%p266_p9), 8   ;;  %vm342_vm4 = vcmask (!%p266_p9), 64512  }
   0xe   : > { %269 = sbr.rel (%p266_p9) target bundleno = 5983 (0x175f), region = 52  ;;  %v3418_v3 = vpack.c.bf16 (!%p266_p9), %v349_v2, %v348_v1  ;;  %s3687_s13 = smov (!%p266_p9), 16   ;;  %vm345_vm5 = vcmask (!%p266_p9), 130048   ;;  %vm356_vm6 = vcmask (!%p266_p9), 195584   ;;  %v2992_v27 = vld [vmem:[%s4387_s6 + $0x8] ss:$0 sm:$0xff] (!%p266_p9) }
   0xf   : > { %v3801_v4 = vshrl.u32 (!%p266_p9), %v305_v0, 7  ;;  %v3688_v41 = vmov (!%p266_p9), 0.0|0.0   ;;  %vm3689_vm7 = vmmov (!%p266_p9), 0   ;;  %v3690_v45 = vmov (!%p266_p9), 0.0   ;;  %v561_v49 = vld [vmem:[%s4382_s1 + $0x18] sm:$0xff] (!%p266_p9)  ;;  %v562_v50 = vld [vmem:[%s4382_s1 + $0x20] sm:$0xff] (!%p266_p9) }
  0x10   : > { %3419 = vmatprep.subr.bf16.mxu0 (!%p266_p9), %v3418_v3  ;;  %3425 = vmatprep.subr.bf16.mxu1 (!%p266_p9), %v3688_v41  ;;  %s3691_s23 = smov (!%p266_p9), 32   ;;  %v563_v55 = vld [vmem:[%s4382_s1 + $0x28] sm:$0xff] (!%p266_p9)  ;;  %v564_v56 = vld [vmem:[%s4382_s1 + $0x30] sm:$0xff] (!%p266_p9)  ;;  %v3426_v58 = vpack.c.bf16 (!%p266_p9), %v562_v50, %v561_v49  ;;  %s4390_s17 = smov (!%p266_p9), 64   ;;  %v565_v61 = vld [vmem:[%s4382_s1 + $0x38] sm:$0xff] (!%p266_p9)  ;;  %vm476_vm8 = vcmask (!%p266_p9), 261120  }
  0x11   : > { %v3807_v6 = vadd.s32 (!%p266_p9), 8, %v3801_v4  ;;  %3421 = vmatpush3.bf16.msra.mxu0 (!%p266_p9), %v3418_v3  ;;  %vm321_vm0 = vcmp.lt.s32.totalorder (!%p266_p9), %v3801_v4, 7  ;;  %vm312_vm1 = vcmp.lt.s32.totalorder (!%p266_p9), %v3801_v4, 1  ;;  %vm308_vm3 = vcmp.eq.s32.totalorder (!%p266_p9), %v3801_v4, 0  ;;  %3220 = vmatprep.mubr.msk.f32.mxu1 (!%p266_p9), %vm3689_vm7, %v3690_v45  ;;  %v566_v62 = vld [vmem:[%s4382_s1 + $0x40] sm:$0xff] (!%p266_p9)  ;;  %v567_v1 = vld [vmem:[%s4382_s1 + $0x48] sm:$0xff] (!%p266_p9) }
  0x12   : > { %3184 = vmatprep.subr.mxu0 (!%p266_p9), %v350_v5  ;;  %3427 = vmatpush3.bf16.msra.mxu1 (!%p266_p9), %v3426_v58  ;;  %v3429_v60 = vpack.c.bf16 (!%p266_p9), %v564_v56, %v563_v55  ;;  %v3432_v63 = vpack.c.bf16 (!%p266_p9), %v566_v62, %v565_v61  ;;  %v568_v2 = vld [vmem:[%s4382_s1 + $0x50] sm:$0xff] (!%p266_p9)  ;;  %vm479_vm9 = vcmask (!%p266_p9), 523264   ;;  %vm578_vm11 = vcmask (!%p266_p9), 785408   ;;  %s3693_s22 = smov (!%p266_p9), 112   ;;  %s3696_s25 = smov (!%p266_p9), 104  }
  0x13   : > { %vm318_vm2 = vcmp.eq.s32.totalorder (!%p266_p9), %v3807_v6, 15  ;;  %3428 = vmatprep.subr.bf16.mxu1 (!%p266_p9), %v3688_v41  ;;  %v3435_v3 = vpack.c.bf16 (!%p266_p9), %v568_v2, %v567_v1  ;;  %v570_v6 = vld [vmem:[%s4382_s1 + $0x60] sm:$0xff] (!%p266_p9)  ;;  %v3001_v62 = vld [vmem:[%s4387_s6 + $0x14] ss:$0 sm:$0xff] (!%p266_p9)  ;;  %s4394_s26 = smov (!%p266_p9), 24   ;;  %s3070_s19 = sshll.u32 (!%p266_p9), %s3765_s9, 4 }
  0x14   : > { %vm2916_vm12 = vcmask (!%p266_p9), 73728  }
  0x15   : > { %s299_s21 = scalar_select %p298_p10, %s3765_s9, 1  ;;  %3185 = vmatpush3.msra.mxu0 %v350_v5  ;;  %v569_v5 = vld [vmem:[%s4382_s1 + $0x58] sm:$0xff] }
  0x16   : > { %3422 = vmatprep.subr.bf16.mxu0 %v3688_v41  ;;  %3430 = vmatpush3.bf16.msra.mxu1 %v3429_v60  ;;  %s3698_s9 = smov [#allocation2]  }
  0x17   : > { %s3073_s24 = sshll.u32 %s299_s21, 4  ;;  %3431 = vmatprep.subr.bf16.mxu1 %v3688_v41  ;;  %s4399_s21 = smov 24  }
  0x18   : > { %s302_s10 = scalar_lea.vmem %s4381_s0, %s3073_s24  ;;  %s4392_s24 = smov 96  }
  0x19   : > { %v303_v7 = vld [vmem:[%s302_s10] sm:$0xff]  ;;  %v304_v8 = vld [vmem:[%s302_s10 + $0x8] sm:$0xff]  ;;  %s296_s10 = sand.u32 1, %s3676_s28  }
  0x1a   : > { %v311_v9 = vrot.slane %v304_v8, 7  ;;  %328 = vrot.lane.b32.xlu0 %v303_v7, %s3686_s12  ;;  %v310_v10 = vrot.slane %v303_v7, 7  ;;  %v319_v11 = vrot.slane %v303_v7, 1  ;;  %v320_v12 = vrot.slane %v304_v8, 1  ;;  %3433 = vmatpush3.bf16.msra.mxu1 %v3432_v63  ;;  %s297_s20 = scalar_lea.vmem [#allocation2], %s296_s10 }
  0x1b   : > { %3434 = vmatprep.subr.bf16.mxu1 %v3688_v41  ;;  %v3438_v7 = vpack.c.bf16 %v570_v6, %v569_v5 }
  0x1c   : > { %v322_v13 = vsel %vm321_vm0, %v319_v11, %v320_v12  ;;  %v323_v14 = vsel %vm321_vm0, %v320_v12, %v319_v11  ;;  %v314_v15 = vsel %vm312_vm1, %v311_v9, %v310_v10  ;;  %v313_v16 = vsel %vm312_vm1, %v310_v10, %v311_v9  ;;  %v572_v9 = vld [vmem:[%s4382_s1 + $0x70] sm:$0xff] }
  0x1d   : > { %336 = vrot.lane.b32.xlu1 %v322_v13, %s3687_s13  ;;  %v325_v17 = vsel %vm318_vm2, 0.0, %v323_v14  ;;  %v315_v18 = vsel %vm308_vm3, 0.0, %v314_v15  ;;  %v483_v14 = vand.u32 127, %v305_v0  ;;  %v484_v15 = vmul.u32 2, %v3801_v4 }
  0x1e   : > { %330 = vrot.lane.b32.xlu0 %v304_v8, %s3686_s12  ;;  %3436 = vmatpush3.bf16.msra.mxu1 %v3435_v3  ;;  %v571_v8 = vld [vmem:[%s4382_s1 + $0x68] sm:$0xff] }
  0x1f   : > { %3437 = vmatprep.subr.bf16.mxu1 %v3688_v41  ;;  %v3441_v10 = vpack.c.bf16 %v572_v9, %v571_v8  ;;  %vm485_vm10 = vcmp.eq.s32.totalorder %v483_v14, %v484_v15 }
  0x20   : > { %v2995_v0 = vsel %vm485_vm10, 1.0, %v3690_v45 }
  0x21   : > { %338 = vrot.lane.b32.xlu1 %v325_v17, %s3687_s13 }
  0x22   : > { %3439 = vmatpush3.bf16.msra.mxu1 %v3438_v7 }
  0x23   : > { %3440 = vmatprep.subr.bf16.mxu1 %v3688_v41 }
  0x26   : > { %3442 = vmatpush3.bf16.msra.mxu1 %v3441_v10 }
  0x27   : > { %3254 = vmatprep.subr.mxu1 %v3690_v45 }
  0x8c   : > { %v329_v19 = vpop.permute.xlu0 %328 }
  0x8d   : > { %v343_v20 = vsel %vm342_vm4, %v315_v18, %v329_v19 }
  0x8f   : > { %v337_v21 = vpop.permute.xlu1 %336 }
  0x90   : > { %v346_v22 = vsel %vm345_vm5, %v343_v20, %v337_v21  ;;  %v331_v23 = vpop.permute.xlu0 %330 }
  0x91   : > { %3186 = vmatprep.mubr.msk.f32.mxu0 %vm356_vm6, %v346_v22  ;;  %v344_v24 = vsel %vm342_vm4, %v313_v16, %v331_v23 }
  0x93   : > { %v339_v25 = vpop.permute.xlu1 %338 }
  0x94   : > { %v347_v26 = vsel %vm345_vm5, %v344_v24, %v339_v25 }
  0x95   : > { %3187 = vmatmul.mubr.msk.f32.vlgmr.msra.gmra.mrb[0].mxu0 %vm356_vm6, %v347_v26  ;;  %v2997_v26 = vld [vmem:[%s4387_s6 + $0x9] ss:$0 sm:$0xff] }
  0x96   : > { %3193 = vmatprep.mubr.msk.f32.mxu0 %vm3689_vm7, %v3690_v45 }
 0x168   : > { %v3188_v28 = vpop.f32.mrb[0].mxu0 }
 0x169   : > { %v435_v29 = vadd.f32 %v3188_v28, %v2992_v27  ;;  %v429_v30 = vpop.f32.mrb[1].mxu0 }
 0x16a   : > { %v430_v31 = vadd.f32 %v2992_v27, %v429_v30 }
 0x16b   : > { %v441_v32 = vmul.f32 0.70710677, %v435_v29  ;;  %v439_v36 = vmul.f32 0.5, %v435_v29 }
 0x16c   : > { %v440_v33 = vmul.f32 0.70710677, %v430_v31  ;;  %v438_v38 = vmul.f32 0.5, %v430_v31 }
 0x16d   : > { %3570 = verf.f32 %v441_v32 }
 0x16e   : > { %3572 = verf.f32 %v440_v33 }
 0x177   : > { %v3571_v34 = vpop.eup %3570 }
 0x178   : > { %v3573_v35 = vpop.eup %3572  ;;  %v445_v37 = vadd.f32 1.0, %v3571_v34  ;;  %v657_v34 = vld [vmem:[%s4387_s6] sm:$0xff] }
 0x179   : > { %v444_v39 = vadd.f32 1.0, %v3573_v35 }
 0x17a   : > { %v447_v40 = vmul.f32 %v445_v37, %v439_v36 }
 0x17b   : > { %v446_v42 = vmul.f32 %v444_v39, %v438_v38 }
 0x17c   : > { %v449_v43 = vrot.slane %v447_v40, 7  ;;  %v455_v44 = vrot.slane %v447_v40, 1 }
 0x17d   : > { %v448_v46 = vrot.slane %v446_v42, 7  ;;  %v454_v47 = vrot.slane %v446_v42, 1  ;;  %v3560_v48 = vpack.i.bf16 %v447_v40, %v446_v42  ;;  %v687_v40 = vld [vmem:[%s4383_s2] sm:$0xff]  ;;  %v688_v42 = vld [vmem:[%s4383_s2 + $0x8] sm:$0xff] }
 0x17f   : > { %3561 = vrot.lane.b32.xlu0 %v3560_v48, %s3691_s23  ;;  %v456_v51 = vsel %vm321_vm0, %v454_v47, %v455_v44  ;;  %v457_v52 = vsel %vm321_vm0, %v455_v44, %v454_v47  ;;  %v450_v53 = vsel %vm312_vm1, %v448_v46, %v449_v43  ;;  %v451_v54 = vsel %vm312_vm1, %v449_v43, %v448_v46  ;;  %v689_v44 = vld [vmem:[%s4383_s2 + $0x10] sm:$0xff]  ;;  %v690_v46 = vld [vmem:[%s4383_s2 + $0x18] sm:$0xff]  ;;  %s3694_s23 = smov 120  }
 0x180   : > { %v459_v57 = vsel %vm318_vm2, 0.0, %v457_v52  ;;  %v452_v17 = vsel %vm308_vm3, 0.0, %v451_v54  ;;  %v3444_v43 = vpack.c.bf16 %v688_v42, %v687_v40  ;;  %v3447_v47 = vpack.c.bf16 %v690_v46, %v689_v44 }
 0x181   : > { %v3565_v59 = vpack.i.bf16 %v459_v57, %v456_v51  ;;  %v2999_v57 = vld [vmem:[%s4387_s6 + $0x10] ss:$0 sm:$0xff] }
 0x183   : > { %3566 = vrot.lane.b32.xlu1 %v3565_v59, %s4390_s17  ;;  %v3000_v59 = vld [vmem:[%s4387_s6 + $0x11] ss:$0 sm:$0xff] }
 0x1f1   : > { %v3562_v11 = vpop.permute.xlu0 %3561 }
 0x1f2   : > { %v3564_v12 = vunpack.i.h.bf16 %v3562_v11  ;;  %v3563_v13 = vunpack.i.l.bf16 %v3562_v11 }
 0x1f4   : > { %v477_v20 = vsel %vm476_vm8, %v452_v17, %v3563_v13  ;;  %v478_v21 = vsel %vm476_vm8, %v450_v53, %v3564_v12 }
 0x1f5   : > { %v3567_v16 = vpop.permute.xlu1 %3566 }
 0x1f6   : > { %v3569_v18 = vunpack.i.h.bf16 %v3567_v16  ;;  %v3568_v19 = vunpack.i.l.bf16 %v3567_v16 }
 0x1f8   : > { %v480_v22 = vsel %vm479_vm9, %v477_v20, %v3568_v19  ;;  %v481_v23 = vsel %vm479_vm9, %v478_v21, %v3569_v18 }
 0x1f9   : > { %v3423_v24 = vpack.c.bf16 %v481_v23, %v480_v22 }
 0x1fb   : > { %3424 = vmatpush3.bf16.msra.mxu0 %v3423_v24 }
 0x1fc   : > { %3443 = vmatprep.subr.bf16.mxu0 %v3688_v41 }
 0x1fe   : > { %3194 = vmatmul.mubr.msk.f32.vlgmr.msra.gmra.mrb[2].mxu0 %vm345_vm5, %v2995_v0 }
 0x1ff   : > { %3231 = vmatprep.mubr.msk.f32.mxu0 %vm3689_vm7, %v3690_v45  ;;  %3445 = vmatpush3.bf16.msra.mxu0 %v3444_v43 }
 0x200   : > { %3446 = vmatprep.subr.bf16.mxu0 %v3688_v41 }
 0x203   : > { %3448 = vmatpush3.bf16.msra.mxu0 %v3447_v47 }
 0x204   : > { %3234 = vmatprep.subr.mxu0 %v3690_v45 }
 0x2d1   : > { %v557_v4 = vpop.f32.mrb[2].mxu0 }
 0x2d2   : > { %v3195_v25 = vpop.f32.mrb[3].mxu0  ;;  %3221 = vmatmul.mubr.msk.f32.vlgmr.msra.gmra.mrb[0].mxu1 %vm578_vm11, %v557_v4 }
 0x2d3   : > { %3256 = vmatprep.mubr.msk.f32.mxu1 %vm3689_vm7, %v3690_v45 }
 0x3a5   : > { %v648_v27 = vpop.f32.mrb[0].mxu1 }
 0x3a6   : > { %v649_v28 = vadd.f32 %v2997_v26, %v648_v27  ;;  %v3222_v29 = vpop.f32.mrb[1].mxu1 }
 0x3a8   : > { %v653_v30 = vmul.f32 0.70710677, %v649_v28  ;;  %v652_v32 = vmul.f32 0.5, %v649_v28 }
 0x3aa   : > { %3574 = verf.f32 %v653_v30 }
 0x3b4   : > { %v3575_v31 = vpop.eup %3574 }
 0x3b5   : > { %v655_v33 = vadd.f32 1.0, %v3575_v31 }
 0x3b7   : > { %v656_v35 = vmul.f32 %v655_v33, %v652_v32 }
 0x3b9   : > { %v3921_v36 = vadd.f32 %v657_v34, %v656_v35 }
 0x3bb   : > { %v661_v37 = vsel %vm476_vm8, %v3921_v36, 0.0  ;;  %v666_v38 = vmul.f32 %v3921_v36, %v3921_v36 }
 0x3bc   : > { %662 = vadd.xlane.f32.xlu0 %v661_v37 }
 0x3bd   : > { %v667_v39 = vsel %vm476_vm8, %v666_v38, 0.0 }
 0x3be   : > { %668 = vadd.xlane.f32.xlu1 %v667_v39 }
 0x449   : > { %v663_v48 = vpop.xlane.xlu0 %662 }
 0x44a   : > { %v665_v49 = vmul.f32 0.03125, %v663_v48 }
 0x44b   : > { %v669_v50 = vpop.xlane.xlu1 %668 }
 0x44c   : > { %v672_v51 = vmul.f32 %v665_v49, %v665_v49  ;;  %v670_v52 = vmul.f32 0.03125, %v669_v50  ;;  %v671_v55 = vsub.f32 %v3921_v36, %v665_v49 }
 0x44e   : > { %v673_v53 = vsub.f32 %v670_v52, %v672_v51 }
 0x450   : > { %v674_v54 = vadd.f32 1e-05, %v673_v53 }
 0x452   : > { %3576 = vrsqrt.f32 %v674_v54 }
 0x45c   : > { %v3577_v56 = vpop.eup %3576 }
 0x45d   : > { %v676_v58 = vmul.f32 %v3577_v56, %v671_v55 }
 0x45f   : > { %v681_v60 = vmul.f32 %v2999_v57, %v676_v58 }
 0x461   : > { %v686_v61 = vadd.f32 %v3000_v59, %v681_v60 }
 0x463   : > { %3232 = vmatmul.mubr.msk.f32.vlgmr.msra.gmra.mrb[4].mxu0 %vm476_vm8, %v686_v61 }
 0x464   : > { %3236 = vmatprep.mubr.msk.f32.mxu0 %vm3689_vm7, %v3690_v45 }
 0x536   : > { %v765_v63 = vpop.f32.mrb[4].mxu0 }
 0x537   : > { %v766_v1 = vadd.f32 %v3001_v62, %v765_v63  ;;  %v3233_v2 = vpop.f32.mrb[5].mxu0  ;;  %v1443_v62 = vld [vmem:[%s4384_s3] sm:$0xff]  ;;  %v1444_v63 = vld [vmem:[%s4384_s3 + $0x8] sm:$0xff] }
 0x538   : > { %v1445_v2 = vld [vmem:[%s4384_s3 + $0x10] sm:$0xff] }
 0x539   : > { %772 = vrot.lane.b32.xlu1 %v766_v1, %s3693_s22  ;;  %770 = vrot.lane.b32.xlu0 %v766_v1, %s3694_s23 }
 0x53d   : > { %776 = vrot.lane.b32.xlu1 %v766_v1, %s4392_s24  ;;  %774 = vrot.lane.b32.xlu0 %v766_v1, %s3696_s25 }
 0x5ab   : > { %v3959_v3 = vpop.permute.xlu1 %772  ;;  %v771_v5 = vpop.permute.xlu0 %770 }
 0x5ac   : > { %928 = vrot.lane.b32.xlu1 %v3959_v3, %s4392_s24  ;;  %852 = vrot.lane.b32.xlu0 %v771_v5, %s4392_s24 }
 0x5af   : > { %v777_v6 = vpop.permute.xlu1 %776  ;;  %v3964_v7 = vpop.permute.xlu0 %774 }
 0x5b0   : > { %3235 = vmatpush3.xpose.msk.msra.mxu0 %vm342_vm4, %v777_v6  ;;  %1004 = vrot.lane.b32.xlu0 %v3964_v7, %s4392_s24 }
 0x5b1   : > { %3239 = vmatprep.subr.mxu0 %v3690_v45 }
 0x5b3   : > { %3237 = vmatmul.mubr.msk.f32.vlgmr.msra.gmra.mrb[6].mxu0 %vm342_vm4, %v766_v1 }
 0x5b4   : > { %3241 = vmatprep.mubr.msk.f32.mxu0 %vm3689_vm7, %v3690_v45 }
 0x61e   : > { %v853_v8 = vpop.permute.xlu0 %852  ;;  %v929_v9 = vpop.permute.xlu1 %928 }
 0x61f   : > { %3240 = vmatpush3.xpose.msk.msra.mxu0 %vm342_vm4, %v853_v8 }
 0x620   : > { %3244 = vmatprep.subr.mxu0 %v3690_v45 }
 0x622   : > { %3242 = vmatmul.mubr.msk.f32.vlgmr.msra.gmra.mrb[8].mxu0 %vm342_vm4, %v771_v5  ;;  %v1005_v10 = vpop.permute.xlu0 %1004 }
 0x623   : > { %3245 = vmatpush3.xpose.msk.msra.mxu0 %vm342_vm4, %v929_v9  ;;  %3246 = vmatprep.mubr.msk.f32.mxu0 %vm3689_vm7, %v3690_v45 }
 0x624   : > { %3249 = vmatprep.subr.mxu0 %v3690_v45 }
 0x626   : > { %3247 = vmatmul.mubr.msk.f32.vlgmr.msra.gmra.mrb[10].mxu0 %vm342_vm4, %v3959_v3 }
 0x627   : > { %3250 = vmatpush3.xpose.msk.msra.mxu0 %vm342_vm4, %v1005_v10  ;;  %3251 = vmatprep.mubr.msk.f32.mxu0 %vm3689_vm7, %v3690_v45 }
 0x628   : > { %3259 = vmatprep.subr.mxu0 %v3690_v45 }
 0x62a   : > { %3252 = vmatmul.mubr.msk.f32.vlgmr.msra.gmra.mrb[12].mxu0 %vm342_vm4, %v3964_v7 }
 0x62b   : > { %3261 = vmatprep.mubr.msk.f32.mxu0 %vm3689_vm7, %v3690_v45 }
 0x686   : > { %v848_v11 = vpop.f32.mrb[6].mxu0 }
 0x687   : > { %v3238_v12 = vpop.f32.mrb[7].mxu0  ;;  %v1080_v13 = vsel %vm342_vm4, %v848_v11, -inf }
 0x688   : > { %1081 = vmax.xlane.f32.xlu1 %v1080_v13 }
 0x6f5   : > { %v924_v14 = vpop.f32.mrb[8].mxu0 }
 0x6f6   : > { %v3243_v15 = vpop.f32.mrb[9].mxu0  ;;  %v1083_v16 = vsel %vm342_vm4, %v924_v14, -inf }
 0x6f7   : > { %1084 = vmax.xlane.f32.xlu0 %v1083_v16 }
 0x6f9   : > { %v1000_v17 = vpop.f32.mrb[10].mxu0 }
 0x6fa   : > { %v3248_v18 = vpop.f32.mrb[11].mxu0  ;;  %v1086_v19 = vsel %vm342_vm4, %v1000_v17, -inf }
 0x6fb   : > { %1087 = vmax.xlane.f32.xlu0 %v1086_v19  ;;  %v3016_v19 = vld [vmem:[%s4387_s6 + $0x15] ss:$0 sm:$0xff] }
 0x6fd   : > { %v1076_v20 = vpop.f32.mrb[12].mxu0 }
 0x6fe   : > { %v3253_v21 = vpop.f32.mrb[13].mxu0  ;;  %v1089_v22 = vsel %vm342_vm4, %v1076_v20, -inf }
 0x6ff   : > { %1090 = vmax.xlane.f32.xlu1 %v1089_v22 }
 0x710   : > { %1200 = vrot.lane.b32.xlu1 %v771_v5, %s4390_s17 }
 0x711   : > { %1124 = vrot.lane.b32.xlu0 %v766_v1, %s4390_s17  ;;  %v3450_v1 = vpack.c.bf16 %v1444_v63, %v1443_v62 }
 0x715   : > { %v1082_v23 = vpop.xlane.xlu1 %1081 }
 0x716   : > { %v1092_v24 = vsub.f32 %v848_v11, %v1082_v23 }
 0x718   : > { %v1096_v0 = vmul.f32 1.442695, %v1092_v24 }
 0x71a   : > { %3578 = vpow2.f32 %v1096_v0 }
 0x724   : > { %v3579_v4 = vpop.eup %3578 }
 0x725   : > { %v1104_v25 = vsel %vm342_vm4, %v3579_v4, 0.0 }
 0x730   : > { %1105 = vadd.xlane.f32.xlu0 %v1104_v25 }
 0x784   : > { %v1085_v26 = vpop.xlane.xlu0 %1084 }
 0x785   : > { %v1093_v27 = vsub.f32 %v924_v14, %v1085_v26  ;;  %v1556_v26 = vld [vmem:[%s4385_s4 + $0x10] sm:$0xff] }
 0x787   : > { %v1098_v28 = vmul.f32 1.442695, %v1093_v27  ;;  %v1557_v27 = vld [vmem:[%s4385_s4 + $0x18] sm:$0xff] }
 0x788   : > { %v1088_v29 = vpop.xlane.xlu0 %1087 }
 0x789   : > { %3580 = vpow2.f32 %v1098_v28  ;;  %v1094_v30 = vsub.f32 %v1000_v17, %v1088_v29  ;;  %v3459_v28 = vpack.c.bf16 %v1557_v27, %v1556_v26  ;;  %v3024_v27 = vld [vmem:[%s4387_s6 + $0x19] ss:$0 sm:$0xff] }
 0x78b   : > { %v1100_v31 = vmul.f32 1.442695, %v1094_v30 }
 0x78c   : > { %v1125_v32 = vpop.permute.xlu0 %1124  ;;  %v1091_v33 = vpop.xlane.xlu1 %1090 }
 0x78d   : > { %3582 = vpow2.f32 %v1100_v31  ;;  %v1095_v34 = vsub.f32 %v1076_v20, %v1091_v33  ;;  %3255 = vmatpush3.msra.mxu1 %v1125_v32 }
 0x78e   : > { %3264 = vmatprep.subr.mxu1 %v3690_v45 }
 0x78f   : > { %v1102_v35 = vmul.f32 1.442695, %v1095_v34 }
 0x790   : > { %v1201_v37 = vpop.permute.xlu1 %1200 }
 0x791   : > { %3584 = vpow2.f32 %v1102_v35  ;;  %3260 = vmatpush3.msra.mxu0 %v1201_v37 }
 0x792   : > { %3269 = vmatprep.subr.mxu0 %v3690_v45 }
 0x793   : > { %v3581_v38 = vpop.eup %3580 }
 0x794   : > { %v1107_v39 = vsel %vm342_vm4, %v3581_v38, 0.0 }
 0x795   : > { %1108 = vadd.xlane.f32.xlu1 %v1107_v39  ;;  %v3017_v39 = vld [vmem:[%s4387_s6 + $0x12] ss:$0 sm:$0xff] }
 0x797   : > { %v3583_v40 = vpop.eup %3582 }
 0x798   : > { %v1110_v42 = vsel %vm342_vm4, %v3583_v40, 0.0 }
 0x799   : > { %1111 = vadd.xlane.f32.xlu0 %v1110_v42  ;;  %v3018_v42 = vld [vmem:[%s4387_s6 + $0x13] ss:$0 sm:$0xff] }
 0x79b   : > { %v3585_v43 = vpop.eup %3584 }
 0x79c   : > { %v1113_v44 = vsel %vm342_vm4, %v3585_v43, 0.0 }
 0x79d   : > { %1114 = vadd.xlane.f32.xlu1 %v1113_v44 }
 0x7ae   : > { %1276 = vrot.lane.b32.xlu1 %v3959_v3, %s4390_s17  ;;  %v1446_v3 = vld [vmem:[%s4384_s3 + $0x18] sm:$0xff] }
 0x7af   : > { %1352 = vrot.lane.b32.xlu0 %v3964_v7, %s4390_s17  ;;  %v3453_v5 = vpack.c.bf16 %v1446_v3, %v1445_v2  ;;  %s4397_s17 = smov 96  }
 0x7bd   : > { %v1106_v46 = vpop.xlane.xlu0 %1105 }
 0x7be   : > { %3586 = vrcp.f32 %v1106_v46  ;;  %v1641_v46 = vld [vmem:[%s4386_s5] sm:$0xff] }
 0x7c8   : > { %v3587_v47 = vpop.eup %3586 }
 0x7c9   : > { %v1120_v48 = vmul.f32 %v3587_v47, %v3579_v4  ;;  %v1554_v4 = vld [vmem:[%s4385_s4] sm:$0xff]  ;;  %v1642_v47 = vld [vmem:[%s4386_s5 + $0x8] sm:$0xff] }
 0x7cb   : > { %3257 = vmatmul.mubr.msk.f32.vlgmr.msra.gmra.mrb[2].mxu1 %vm342_vm4, %v1120_v48  ;;  %v3462_v48 = vpack.c.bf16 %v1642_v47, %v1641_v46 }
 0x7cc   : > { %3266 = vmatprep.mubr.msk.f32.mxu1 %vm3689_vm7, %v3690_v45 }
 0x822   : > { %v1109_v49 = vpop.xlane.xlu1 %1108 }
 0x823   : > { %3588 = vrcp.f32 %v1109_v49  ;;  %v1643_v49 = vld [vmem:[%s4386_s5 + $0x10] sm:$0xff] }
 0x826   : > { %v1112_v50 = vpop.xlane.xlu0 %1111 }
 0x827   : > { %3590 = vrcp.f32 %v1112_v50  ;;  %v1644_v50 = vld [vmem:[%s4386_s5 + $0x18] sm:$0xff] }
 0x82a   : > { %v1115_v51 = vpop.xlane.xlu1 %1114  ;;  %v1353_v55 = vpop.permute.xlu0 %1352 }
 0x82b   : > { %3592 = vrcp.f32 %v1115_v51  ;;  %v3465_v51 = vpack.c.bf16 %v1644_v50, %v1643_v49 }
 0x82d   : > { %v3589_v52 = vpop.eup %3588 }
 0x82e   : > { %v1121_v53 = vmul.f32 %v3589_v52, %v3581_v38  ;;  %v1277_v54 = vpop.permute.xlu1 %1276  ;;  %v1645_v52 = vld [vmem:[%s4386_s5 + $0x20] sm:$0xff] }
 0x82f   : > { %3265 = vmatpush3.msra.mxu1 %v1277_v54 }
 0x830   : > { %3262 = vmatmul.mubr.msk.f32.vlgmr.msra.gmra.mrb[14].mxu0 %vm342_vm4, %v1121_v53  ;;  %3449 = vmatprep.subr.bf16.mxu1 %v3688_v41  ;;  %v1646_v53 = vld [vmem:[%s4386_s5 + $0x28] sm:$0xff] }
 0x831   : > { %v3591_v56 = vpop.eup %3590  ;;  %3270 = vmatpush3.msra.mxu0 %v1353_v55  ;;  %3271 = vmatprep.mubr.msk.f32.mxu0 %vm3689_vm7, %v3690_v45  ;;  %v3468_v54 = vpack.c.bf16 %v1646_v53, %v1645_v52  ;;  %v1647_v55 = vld [vmem:[%s4386_s5 + $0x30] sm:$0xff] }
 0x832   : > { %v1122_v57 = vmul.f32 %v3591_v56, %v3583_v40  ;;  %3455 = vmatprep.subr.bf16.mxu0 %v3688_v41  ;;  %v1648_v56 = vld [vmem:[%s4386_s5 + $0x38] sm:$0xff] }
 0x834   : > { %3267 = vmatmul.mubr.msk.f32.vlgmr.msra.gmra.mrb[4].mxu1 %vm342_vm4, %v1122_v57  ;;  %v3471_v57 = vpack.c.bf16 %v1648_v56, %v1647_v55 }
 0x835   : > { %v3593_v58 = vpop.eup %3592  ;;  %3282 = vmatprep.mubr.msk.f32.mxu1 %vm3689_vm7, %v3690_v45  ;;  %3451 = vmatpush3.bf16.msra.mxu1 %v3450_v1 }
 0x836   : > { %v1123_v59 = vmul.f32 %v3593_v58, %v3585_v43  ;;  %3452 = vmatprep.subr.bf16.mxu1 %v3688_v41  ;;  %v3019_v58 = vld [vmem:[%s4387_s6 + $0x16] ss:$0 sm:$0xff] }
 0x838   : > { %3272 = vmatmul.mubr.msk.f32.vlgmr.msra.gmra.mrb[16].mxu0 %vm342_vm4, %v1123_v59 }
 0x839   : > { %3293 = vmatprep.mubr.msk.f32.mxu0 %vm3689_vm7, %v3690_v45  ;;  %3454 = vmatpush3.bf16.msra.mxu1 %v3453_v5 }
 0x83a   : > { %3461 = vmatprep.subr.bf16.mxu1 %v3688_v41 }
 0x89e   : > { %v1196_v60 = vpop.f32.mrb[2].mxu1 }
 0x89f   : > { %v3258_v61 = vpop.f32.mrb[3].mxu1 }
 0x903   : > { %v1272_v6 = vpop.f32.mrb[14].mxu0 }
 0x904   : > { %1429 = vrot.lane.b32.xlu1 %v1272_v6, %s3686_s12  ;;  %v3263_v7 = vpop.f32.mrb[15].mxu0  ;;  %v3022_v6 = vld [vmem:[%s4387_s6 + $0x17] ss:$0 sm:$0xff] }
 0x907   : > { %v1348_v8 = vpop.f32.mrb[4].mxu1 }
 0x908   : > { %1433 = vrot.lane.b32.xlu0 %v1348_v8, %s3687_s13  ;;  %v3268_v9 = vpop.f32.mrb[5].mxu1 }
 0x90b   : > { %v1424_v10 = vpop.f32.mrb[16].mxu0 }
 0x90c   : > { %1437 = vrot.lane.b32.xlu1 %v1424_v10, %s4394_s26  ;;  %v3273_v11 = vpop.f32.mrb[17].mxu0 }
 0x976   : > { %v1430_v12 = vpop.permute.xlu1 %1429 }
 0x977   : > { %v1440_v14 = vsel %vm342_vm4, %v1196_v60, %v1430_v12 }
 0x97a   : > { %v1434_v13 = vpop.permute.xlu0 %1433 }
 0x97b   : > { %v1441_v15 = vsel %vm345_vm5, %v1440_v14, %v1434_v13  ;;  %v3025_v13 = vld [vmem:[%s4383_s2 + $0x20] sm:$0xff]  ;;  %v3026_v14 = vld [vmem:[%s4383_s2 + $0x28] sm:$0xff] }
 0x97e   : > { %v1438_v16 = vpop.permute.xlu1 %1437 }
 0x97f   : > { %v1442_v17 = vsel %vm356_vm6, %v1441_v15, %v1438_v16  ;;  %v3474_v15 = vpack.c.bf16 %v3026_v14, %v3025_v13  ;;  %v3027_v16 = vld [vmem:[%s4383_s2 + $0x30] sm:$0xff] }
 0x980   : > { %3283 = vmatmul.mubr.msk.f32.vlgmr.msra.gmra.mrb[6].mxu1 %vm476_vm8, %v1442_v17  ;;  %v3028_v17 = vld [vmem:[%s4383_s2 + $0x38] sm:$0xff] }
 0x981   : > { %3312 = vmatprep.mubr.msk.f32.mxu1 %vm3689_vm7, %v3690_v45  ;;  %3463 = vmatpush3.bf16.msra.mxu1 %v3462_v48 }
 0x982   : > { %3464 = vmatprep.subr.bf16.mxu1 %v3688_v41 }
 0x985   : > { %3466 = vmatpush3.bf16.msra.mxu1 %v3465_v51 }
 0x986   : > { %3467 = vmatprep.subr.bf16.mxu1 %v3688_v41 }
 0x989   : > { %3469 = vmatpush3.bf16.msra.mxu1 %v3468_v54 }
 0x98a   : > { %3470 = vmatprep.subr.bf16.mxu1 %v3688_v41 }
 0x98d   : > { %3472 = vmatpush3.bf16.msra.mxu1 %v3471_v57 }
 0x98e   : > { %3336 = vmatprep.subr.mxu1 %v3690_v45 }
 0xa53   : > { %v1516_v18 = vpop.f32.mrb[6].mxu1 }
 0xa54   : > { %v1520_v20 = vadd.f32 %v1516_v18, %v3921_v36  ;;  %v3284_v21 = vpop.f32.mrb[7].mxu1  ;;  %v1555_v36 = vld [vmem:[%s4385_s4 + $0x8] sm:$0xff]  ;;  %v3477_v18 = vpack.c.bf16 %v3028_v17, %v3027_v16 }
 0xa55   : > { %v3456_v25 = vpack.c.bf16 %v1555_v36, %v1554_v4 }
 0xa56   : > { %v4047_v22 = vadd.f32 %v3016_v19, %v1520_v20 }
 0xa57   : > { %3457 = vmatpush3.bf16.msra.mxu0 %v3456_v25  ;;  %v3023_v25 = vld [vmem:[%s4387_s6 + $0x18] ss:$0 sm:$0xff] }
 0xa58   : > { %v1529_v23 = vsel %vm476_vm8, %v4047_v22, 0.0  ;;  %v1533_v24 = vmul.f32 %v4047_v22, %v4047_v22  ;;  %3458 = vmatprep.subr.bf16.mxu0 %v3688_v41 }
 0xa59   : > { %1530 = vadd.xlane.f32.xlu0 %v1529_v23 }
 0xa5a   : > { %v1534_v0 = vsel %vm476_vm8, %v1533_v24, 0.0 }
 0xa5b   : > { %1535 = vadd.xlane.f32.xlu1 %v1534_v0  ;;  %3460 = vmatpush3.bf16.msra.mxu0 %v3459_v28 }
 0xa5c   : > { %3473 = vmatprep.subr.bf16.mxu0 %v3688_v41 }
 0xae6   : > { %v1531_v29 = vpop.xlane.xlu0 %1530 }
 0xae7   : > { %v1532_v30 = vmul.f32 0.03125, %v1531_v29 }
 0xae8   : > { %v1536_v31 = vpop.xlane.xlu1 %1535 }
 0xae9   : > { %v1539_v32 = vmul.f32 %v1532_v30, %v1532_v30  ;;  %v1537_v33 = vmul.f32 0.03125, %v1536_v31  ;;  %v1538_v37 = vsub.f32 %v4047_v22, %v1532_v30  ;;  %v3029_v30 = vld [vmem:[%s4387_s6 + $0x1c] ss:$0 sm:$0xff] }
 0xaeb   : > { %v1540_v34 = vsub.f32 %v1537_v33, %v1539_v32 }
 0xaed   : > { %v1541_v35 = vadd.f32 1e-05, %v1540_v34 }
 0xaef   : > { %3594 = vrsqrt.f32 %v1541_v35 }
 0xaf9   : > { %v3595_v38 = vpop.eup %3594 }
 0xafa   : > { %v1543_v40 = vmul.f32 %v3595_v38, %v1538_v37 }
 0xafc   : > { %v1548_v43 = vmul.f32 %v3017_v39, %v1543_v40 }
 0xafe   : > { %v1553_v44 = vadd.f32 %v3018_v42, %v1548_v43 }
 0xb00   : > { %3294 = vmatmul.mubr.msk.f32.vlgmr.msra.gmra.mrb[18].mxu0 %vm476_vm8, %v1553_v44 }
 0xb01   : > { %3323 = vmatprep.mubr.msk.f32.mxu0 %vm3689_vm7, %v3690_v45  ;;  %3475 = vmatpush3.bf16.msra.mxu0 %v3474_v15 }
 0xb02   : > { %3476 = vmatprep.subr.bf16.mxu0 %v3688_v41 }
 0xb05   : > { %3478 = vmatpush3.bf16.msra.mxu0 %v3477_v18 }
 0xb06   : > { %3326 = vmatprep.subr.mxu0 %v3690_v45 }
 0xbd3   : > { %v1632_v59 = vpop.f32.mrb[18].mxu0 }
 0xbd4   : > { %v1633_v60 = vadd.f32 %v3019_v58, %v1632_v59  ;;  %v3295_v61 = vpop.f32.mrb[19].mxu0 }
 0xbd6   : > { %v1637_v62 = vmul.f32 0.70710677, %v1633_v60  ;;  %v1636_v1 = vmul.f32 0.5, %v1633_v60 }
 0xbd8   : > { %3596 = verf.f32 %v1637_v62 }
 0xbe2   : > { %v3597_v63 = vpop.eup %3596 }
 0xbe3   : > { %v1639_v2 = vadd.f32 1.0, %v3597_v63 }
 0xbe5   : > { %v1640_v3 = vmul.f32 %v1639_v2, %v1636_v1 }
 0xbe7   : > { %3313 = vmatmul.mubr.msk.f32.vlgmr.msra.gmra.mrb[8].mxu1 %vm479_vm9, %v1640_v3 }
 0xbe8   : > { %3338 = vmatprep.mubr.msk.f32.mxu1 %vm3689_vm7, %v3690_v45 }
 0xcba   : > { %v1718_v5 = vpop.f32.mrb[8].mxu1 }
 0xcbb   : > { %v1722_v7 = vadd.f32 %v1718_v5, %v4047_v22  ;;  %v3314_v8 = vpop.f32.mrb[9].mxu1 }
 0xcbd   : > { %v4116_v9 = vadd.f32 %v3022_v6, %v1722_v7 }
 0xcbf   : > { %v1731_v10 = vsel %vm476_vm8, %v4116_v9, 0.0  ;;  %v1735_v11 = vmul.f32 %v4116_v9, %v4116_v9 }
 0xcc0   : > { %1732 = vadd.xlane.f32.xlu0 %v1731_v10 }
 0xcc1   : > { %v1736_v12 = vsel %vm476_vm8, %v1735_v11, 0.0 }
 0xcc4   : > { %1737 = vadd.xlane.f32.xlu0 %v1736_v12 }
 0xd4d   : > { %v1733_v19 = vpop.xlane.xlu0 %1732 }
 0xd4e   : > { %v1734_v20 = vmul.f32 0.03125, %v1733_v19 }
 0xd50   : > { %v1741_v22 = vmul.f32 %v1734_v20, %v1734_v20  ;;  %v1740_v4 = vsub.f32 %v4116_v9, %v1734_v20 }
 0xd51   : > { %v1738_v21 = vpop.xlane.xlu0 %1737 }
 0xd52   : > { %v1739_v23 = vmul.f32 0.03125, %v1738_v21 }
 0xd54   : > { %v1742_v24 = vsub.f32 %v1739_v23, %v1741_v22 }
 0xd56   : > { %v1743_v0 = vadd.f32 1e-05, %v1742_v24 }
 0xd58   : > { %3598 = vrsqrt.f32 %v1743_v0 }
 0xd62   : > { %v3599_v36 = vpop.eup %3598 }
 0xd63   : > { %v1745_v26 = vmul.f32 %v3599_v36, %v1740_v4 }
 0xd65   : > { %v1750_v28 = vmul.f32 %v3023_v25, %v1745_v26 }
 0xd67   : > { %v1755_v29 = vadd.f32 %v3024_v27, %v1750_v28  ;;  %v3043_v28 = vld [vmem:[%s4384_s3 + $0x20] sm:$0xff] }
 0xd69   : > { %3324 = vmatmul.mubr.msk.f32.vlgmr.msra.gmra.mrb[20].mxu0 %vm476_vm8, %v1755_v29  ;;  %v3044_v29 = vld [vmem:[%s4384_s3 + $0x28] sm:$0xff] }
 0xd6a   : > { %3328 = vmatprep.mubr.msk.f32.mxu0 %vm3689_vm7, %v3690_v45 }
 0xe3c   : > { %v1835_v31 = vpop.f32.mrb[20].mxu0 }
 0xe3d   : > { %v1836_v32 = vadd.f32 %v3029_v30, %v1835_v31  ;;  %v3325_v33 = vpop.f32.mrb[21].mxu0  ;;  %v3480_v30 = vpack.c.bf16 %v3044_v29, %v3043_v28 }
 0xe3e   : > { %v3045_v33 = vld [vmem:[%s4384_s3 + $0x30] sm:$0xff] }
 0xe3f   : > { %1842 = vrot.lane.b32.xlu0 %v1836_v32, %s3693_s22  ;;  %1840 = vrot.lane.b32.xlu1 %v1836_v32, %s3694_s23  ;;  %s4398_s22 = smov 64  }
 0xe43   : > { %1844 = vrot.lane.b32.xlu1 %v1836_v32, %s3696_s25  ;;  %s3626_s25 = sshll.u32 %s3698_s9, 4  ;;  %s3627_s25 = int_to_ptr.vmem [resolvable:$false] %s3626_s25 }
 0xe44   : > { %s3628_s24 = scalar_lea.vmem %s3627_s25, 32 }
 0xe47   : > { %1846 = vrot.lane.b32.xlu1 %v1836_v32, %s4397_s17 }
 0xeb1   : > { %v4154_v34 = vpop.permute.xlu0 %1842  ;;  %v1841_v35 = vpop.permute.xlu1 %1840 }
 0xeb2   : > { %1998 = vrot.lane.b32.xlu1 %v4154_v34, %s4397_s17  ;;  %1922 = vrot.lane.b32.xlu0 %v1841_v35, %s4397_s17 }
 0xeb5   : > { %v4159_v37 = vpop.permute.xlu1 %1844 }
 0xeb6   : > { %2074 = vrot.lane.b32.xlu0 %v4159_v37, %s4397_s17  ;;  %s4339_s17 = scalar_lea.hbm %s4389_s8, %s3070_s19 }
 0xeb9   : > { %v1847_v38 = vpop.permute.xlu1 %1846 }
 0xeba   : > { %3327 = vmatpush3.xpose.msk.msra.mxu0 %vm342_vm4, %v1847_v38 }
 0xebb   : > { %3331 = vmatprep.subr.mxu0 %v3690_v45 }
 0xebd   : > { %3329 = vmatmul.mubr.msk.f32.vlgmr.msra.gmra.mrb[22].mxu0 %vm342_vm4, %v1836_v32 }
 0xebe   : > { %3333 = vmatprep.mubr.msk.f32.mxu0 %vm3689_vm7, %v3690_v45 }
 0xf24   : > { %v1923_v39 = vpop.permute.xlu0 %1922  ;;  %v1999_v40 = vpop.permute.xlu1 %1998 }
 0xf25   : > { %3332 = vmatpush3.xpose.msk.msra.mxu0 %vm342_vm4, %v1923_v39  ;;  %3337 = vmatpush3.xpose.msk.msra.mxu1 %vm342_vm4, %v1999_v40 }
 0xf26   : > { %3341 = vmatprep.subr.mxu0 %v3690_v45  ;;  %3346 = vmatprep.subr.mxu1 %v3690_v45 }
 0xf28   : > { %v2075_v42 = vpop.permute.xlu0 %2074  ;;  %3334 = vmatmul.mubr.msk.f32.vlgmr.msra.gmra.mrb[24].mxu0 %vm342_vm4, %v1841_v35  ;;  %3339 = vmatmul.mubr.msk.f32.vlgmr.msra.gmra.mrb[10].mxu1 %vm342_vm4, %v4154_v34 }
 0xf29   : > { %3342 = vmatpush3.xpose.msk.msra.mxu0 %vm342_vm4, %v2075_v42  ;;  %3343 = vmatprep.mubr.msk.f32.mxu0 %vm3689_vm7, %v3690_v45 }
 0xf2a   : > { %3351 = vmatprep.subr.mxu0 %v3690_v45  ;;  %3348 = vmatprep.mubr.msk.f32.mxu1 %vm3689_vm7, %v3690_v45 }
 0xf2c   : > { %3344 = vmatmul.mubr.msk.f32.vlgmr.msra.gmra.mrb[26].mxu0 %vm342_vm4, %v4159_v37 }
 0xf2d   : > { %3353 = vmatprep.mubr.msk.f32.mxu0 %vm3689_vm7, %v3690_v45 }
 0xf90   : > { %v1918_v43 = vpop.f32.mrb[22].mxu0 }
 0xf91   : > { %v3330_v44 = vpop.f32.mrb[23].mxu0  ;;  %v2150_v46 = vsel %vm342_vm4, %v1918_v43, -inf }
 0xf92   : > { %2151 = vmax.xlane.f32.xlu1 %v2150_v46 }
 0xffb   : > { %v1994_v47 = vpop.f32.mrb[24].mxu0  ;;  %v2070_v48 = vpop.f32.mrb[10].mxu1 }
 0xffc   : > { %v3335_v49 = vpop.f32.mrb[25].mxu0  ;;  %v3340_v50 = vpop.f32.mrb[11].mxu1  ;;  %v2153_v51 = vsel %vm342_vm4, %v1994_v47, -inf  ;;  %v2156_v54 = vsel %vm342_vm4, %v2070_v48, -inf }
 0xffd   : > { %2154 = vmax.xlane.f32.xlu0 %v2153_v51 }
 0xfff   : > { %v2146_v52 = vpop.f32.mrb[26].mxu0 }
0x1000   : > { %v3345_v53 = vpop.f32.mrb[27].mxu0  ;;  %v2159_v55 = vsel %vm342_vm4, %v2146_v52, -inf }
0x1001   : > { %2157 = vmax.xlane.f32.xlu0 %v2156_v54  ;;  %2160 = vmax.xlane.f32.xlu1 %v2159_v55 }
0x1012   : > { %2270 = vrot.lane.b32.xlu1 %v1841_v35, %s4398_s22 }
0x1017   : > { %2194 = vrot.lane.b32.xlu0 %v1836_v32, %s4398_s22 }
0x101f   : > { %v2152_v56 = vpop.xlane.xlu1 %2151 }
0x1020   : > { %v2162_v57 = vsub.f32 %v1918_v43, %v2152_v56 }
0x1022   : > { %v2166_v58 = vmul.f32 1.442695, %v2162_v57 }
0x1024   : > { %3600 = vpow2.f32 %v2166_v58 }
0x102e   : > { %v3601_v59 = vpop.eup %3600 }
0x102f   : > { %v2174_v60 = vsel %vm342_vm4, %v3601_v59, 0.0 }
0x1036   : > { %2175 = vadd.xlane.f32.xlu0 %v2174_v60 }
0x108a   : > { %v2155_v61 = vpop.xlane.xlu0 %2154 }
0x108b   : > { %v2163_v62 = vsub.f32 %v1994_v47, %v2155_v61  ;;  %v3053_v61 = vld [vmem:[%s4385_s4 + $0x30] sm:$0xff] }
0x108d   : > { %v2168_v63 = vmul.f32 1.442695, %v2163_v62  ;;  %v3054_v62 = vld [vmem:[%s4385_s4 + $0x38] sm:$0xff] }
0x108e   : > { %v2158_v1 = vpop.xlane.xlu0 %2157  ;;  %v2161_v2 = vpop.xlane.xlu1 %2160 }
0x108f   : > { %3602 = vpow2.f32 %v2168_v63  ;;  %v2164_v3 = vsub.f32 %v2070_v48, %v2158_v1  ;;  %v2165_v5 = vsub.f32 %v2146_v52, %v2161_v2  ;;  %v3048_v52 = vld [vmem:[%s4387_s6 + $0x1d] ss:$0 sm:$0xff]  ;;  %v3489_v63 = vpack.c.bf16 %v3054_v62, %v3053_v61 }
0x1091   : > { %v2170_v6 = vmul.f32 1.442695, %v2164_v3  ;;  %v2172_v7 = vmul.f32 1.442695, %v2165_v5 }
0x1092   : > { %v2195_v8 = vpop.permute.xlu0 %2194  ;;  %v2271_v10 = vpop.permute.xlu1 %2270 }
0x1093   : > { %3604 = vpow2.f32 %v2170_v6  ;;  %3347 = vmatpush3.msra.mxu1 %v2195_v8  ;;  %3352 = vmatpush3.msra.mxu0 %v2271_v10 }
0x1094   : > { %3606 = vpow2.f32 %v2172_v7  ;;  %3356 = vmatprep.subr.mxu1 %v3690_v45  ;;  %3361 = vmatprep.subr.mxu0 %v3690_v45 }
0x1099   : > { %v3603_v11 = vpop.eup %3602 }
0x109a   : > { %v2177_v12 = vsel %vm342_vm4, %v3603_v11, 0.0 }
0x109b   : > { %2178 = vadd.xlane.f32.xlu1 %v2177_v12  ;;  %v3049_v12 = vld [vmem:[%s4387_s6 + $0x1a] ss:$0 sm:$0xff] }
0x109d   : > { %v3605_v13 = vpop.eup %3604 }
0x109e   : > { %v3607_v14 = vpop.eup %3606  ;;  %v2180_v15 = vsel %vm342_vm4, %v3605_v13, 0.0 }
0x109f   : > { %2181 = vadd.xlane.f32.xlu0 %v2180_v15  ;;  %v2183_v16 = vsel %vm342_vm4, %v3607_v14, 0.0 }
0x10a0   : > { %2184 = vadd.xlane.f32.xlu1 %v2183_v16 }
0x10b1   : > { %2346 = vrot.lane.b32.xlu1 %v4154_v34, %s4398_s22  ;;  %v3046_v34 = vld [vmem:[%s4384_s3 + $0x38] sm:$0xff] }
0x10b2   : > { %v3483_v35 = vpack.c.bf16 %v3046_v34, %v3045_v33 }
0x10b5   : > { %2422 = vrot.lane.b32.xlu0 %v4159_v37, %s4398_s22  ;;  %s2919_s22 = scalar_lea.sflag [#allocation3], %s296_s10 }
0x10c3   : > { %v2176_v17 = vpop.xlane.xlu0 %2175 }
0x10c4   : > { %3608 = vrcp.f32 %v2176_v17  ;;  %v3057_v17 = vld [vmem:[%s4386_s5 + $0x40] sm:$0xff] }
0x10ce   : > { %v3609_v18 = vpop.eup %3608 }
0x10cf   : > { %v2190_v19 = vmul.f32 %v3609_v18, %v3601_v59  ;;  %v3051_v59 = vld [vmem:[%s4385_s4 + $0x20] sm:$0xff]  ;;  %v3058_v18 = vld [vmem:[%s4386_s5 + $0x48] sm:$0xff] }
0x10d1   : > { %3349 = vmatmul.mubr.msk.f32.vlgmr.msra.gmra.mrb[12].mxu1 %vm342_vm4, %v2190_v19  ;;  %v3492_v19 = vpack.c.bf16 %v3058_v18, %v3057_v17 }
0x10d2   : > { %3358 = vmatprep.mubr.msk.f32.mxu1 %vm3689_vm7, %v3690_v45 }
0x1128   : > { %v2179_v20 = vpop.xlane.xlu1 %2178 }
0x1129   : > { %3610 = vrcp.f32 %v2179_v20  ;;  %v3059_v20 = vld [vmem:[%s4386_s5 + $0x50] sm:$0xff] }
0x112c   : > { %v2182_v21 = vpop.xlane.xlu0 %2181 }
0x112d   : > { %3612 = vrcp.f32 %v2182_v21  ;;  %v2185_v22 = vpop.xlane.xlu1 %2184 }
0x112e   : > { %3614 = vrcp.f32 %v2185_v22  ;;  %v3061_v22 = vld [vmem:[%s4386_s5 + $0x60] sm:$0xff] }
0x1130   : > { %v2423_v4 = vpop.permute.xlu0 %2422 }
0x1131   : > { %v2347_v23 = vpop.permute.xlu1 %2346 }
0x1132   : > { %3357 = vmatpush3.msra.mxu1 %v2347_v23  ;;  %v3062_v23 = vld [vmem:[%s4386_s5 + $0x68] sm:$0xff] }
0x1133   : > { %v3611_v24 = vpop.eup %3610  ;;  %3479 = vmatprep.subr.bf16.mxu1 %v3688_v41 }
0x1134   : > { %v2191_v0 = vmul.f32 %v3611_v24, %v3603_v11  ;;  %v3498_v24 = vpack.c.bf16 %v3062_v23, %v3061_v22 }
0x1136   : > { %3354 = vmatmul.mubr.msk.f32.vlgmr.msra.gmra.mrb[28].mxu0 %vm342_vm4, %v2191_v0  ;;  %v3063_v0 = vld [vmem:[%s4386_s5 + $0x70] sm:$0xff] }
0x1137   : > { %v3613_v36 = vpop.eup %3612  ;;  %3362 = vmatpush3.msra.mxu0 %v2423_v4  ;;  %3363 = vmatprep.mubr.msk.f32.mxu0 %vm3689_vm7, %v3690_v45  ;;  %v3064_v4 = vld [vmem:[%s4386_s5 + $0x78] sm:$0xff] }
0x1138   : > { %v3615_v25 = vpop.eup %3614  ;;  %v2192_v26 = vmul.f32 %v3613_v36, %v3605_v13  ;;  %3485 = vmatprep.subr.bf16.mxu0 %v3688_v41  ;;  %v3501_v36 = vpack.c.bf16 %v3064_v4, %v3063_v0 }
0x1139   : > { %v2193_v27 = vmul.f32 %v3615_v25, %v3607_v14  ;;  %v3050_v14 = vld [vmem:[%s4387_s6 + $0x1b] ss:$0 sm:$0xff]  ;;  %v3055_v25 = vld [vmem:[%s4387_s6 + $0x1e] ss:$0 sm:$0xff] }
0x113a   : > { %3359 = vmatmul.mubr.msk.f32.vlgmr.msra.gmra.mrb[14].mxu1 %vm342_vm4, %v2192_v26 }
0x113b   : > { %3364 = vmatmul.mubr.msk.f32.vlgmr.msra.gmra.mrb[30].mxu0 %vm342_vm4, %v2193_v27  ;;  %3374 = vmatprep.mubr.msk.f32.mxu1 %vm3689_vm7, %v3690_v45 }
0x113c   : > { %3385 = vmatprep.mubr.msk.f32.mxu0 %vm3689_vm7, %v3690_v45  ;;  %3481 = vmatpush3.bf16.msra.mxu1 %v3480_v30 }
0x113d   : > { %3482 = vmatprep.subr.bf16.mxu1 %v3688_v41 }
0x1140   : > { %3484 = vmatpush3.bf16.msra.mxu1 %v3483_v35  ;;  %v3066_v35 = vld [vmem:[%s4387_s6 + $0x1f] ss:$0 sm:$0xff] }
0x1141   : > { %3491 = vmatprep.subr.bf16.mxu1 %v3688_v41 }
0x11a4   : > { %v2266_v31 = vpop.f32.mrb[12].mxu1 }
0x11a5   : > { %v3350_v32 = vpop.f32.mrb[13].mxu1 }
0x1209   : > { %v2342_v37 = vpop.f32.mrb[28].mxu0 }
0x120a   : > { %2499 = vrot.lane.b32.xlu1 %v2342_v37, %s3686_s12  ;;  %v3355_v38 = vpop.f32.mrb[29].mxu0 }
0x120d   : > { %v2418_v39 = vpop.f32.mrb[14].mxu1 }
0x120e   : > { %v2494_v40 = vpop.f32.mrb[30].mxu0  ;;  %2503 = vrot.lane.b32.xlu0 %v2418_v39, %s3687_s13  ;;  %v3360_v42 = vpop.f32.mrb[15].mxu1 }
0x120f   : > { %2507 = vrot.lane.b32.xlu1 %v2494_v40, %s4399_s21  ;;  %v3365_v43 = vpop.f32.mrb[31].mxu0  ;;  %s2931_s21 = sshll.u32 %s297_s20, 4  ;;  %s4341_s21 = int_to_ptr.vmem [resolvable:$true] %s2931_s21 }
0x1210   : > { %s3622_s23 = scalar_lea.vmem %s4341_s21, 16  ;;  %p3629_p0 = scmp.lt.s32.totalorder %s4341_s21, %s3627_s25 }
0x1211   : > { %p3623_p11 = scmp.ne.s32.totalorder %s4341_s21, %s3622_s23  ;;  %p3630_p1 = scmp.lt.s32.totalorder %s3628_s24, %s3622_s23 }
0x1213   : > { %p3624_p12 = pnand %p3623_p11, %p3782_p5  ;;  %p3631_p2 = por %p3630_p1, %p3629_p0 }
0x1215   : > { %p3625_p13 = pneg %p3624_p12 }
0x1217   : > { %p3632_p3 = pnand %p3631_p2, %p3625_p13 }
0x127c   : > { %v2500_v44 = vpop.permute.xlu1 %2499 }
0x127d   : > { %v2510_v46 = vsel %vm342_vm4, %v2266_v31, %v2500_v44  ;;  %v2838_v44 = vld [vmem:[%s4388_s7] sm:$0xff] }
0x1280   : > { %v2504_v47 = vpop.permute.xlu0 %2503 }
0x1281   : > { %v2511_v48 = vsel %vm345_vm5, %v2510_v46, %v2504_v47  ;;  %v2508_v49 = vpop.permute.xlu1 %2507  ;;  %v2839_v46 = vld [vmem:[%s4388_s7 + $0x8] sm:$0xff]  ;;  %v2840_v47 = vld [vmem:[%s4388_s7 + $0x10] sm:$0xff] }
0x1282   : > { %v2512_v50 = vsel %vm356_vm6, %v2511_v48, %v2508_v49  ;;  %v3504_v48 = vpack.c.bf16 %v2839_v46, %v2838_v44  ;;  %v2841_v49 = vld [vmem:[%s4388_s7 + $0x18] sm:$0xff] }
0x1283   : > { %3375 = vmatmul.mubr.msk.f32.vlgmr.msra.gmra.mrb[16].mxu1 %vm476_vm8, %v2512_v50  ;;  %v3507_v50 = vpack.c.bf16 %v2841_v49, %v2840_v47 }
0x1284   : > { %3404 = vmatprep.mubr.msk.f32.mxu1 %vm3689_vm7, %v3690_v45  ;;  %3493 = vmatpush3.bf16.msra.mxu1 %v3492_v19 }
0x1285   : > { %3494 = vmatprep.subr.bf16.mxu1 %v3688_v41 }
0x1356   : > { %v2587_v51 = vpop.f32.mrb[16].mxu1 }
0x1357   : > { %v2591_v53 = vadd.f32 %v2587_v51, %v4116_v9  ;;  %v3376_v54 = vpop.f32.mrb[17].mxu1  ;;  %v3052_v9 = vld [vmem:[%s4385_s4 + $0x28] sm:$0xff] }
0x1358   : > { %v3486_v60 = vpack.c.bf16 %v3052_v9, %v3051_v59  ;;  %v3067_v9 = vld [vmem:[%s4387_s6 + $0xa] ss:$0 sm:$0xff] }
0x1359   : > { %v4242_v55 = vadd.f32 %v3048_v52, %v2591_v53 }
0x135a   : > { %3487 = vmatpush3.bf16.msra.mxu0 %v3486_v60 }
0x135b   : > { %v2600_v56 = vsel %vm476_vm8, %v4242_v55, 0.0  ;;  %v2604_v57 = vmul.f32 %v4242_v55, %v4242_v55  ;;  %3488 = vmatprep.subr.bf16.mxu0 %v3688_v41 }
0x135c   : > { %2601 = vadd.xlane.f32.xlu0 %v2600_v56 }
0x135d   : > { %v2605_v58 = vsel %vm476_vm8, %v2604_v57, 0.0 }
0x135e   : > { %2606 = vadd.xlane.f32.xlu1 %v2605_v58  ;;  %3490 = vmatpush3.bf16.msra.mxu0 %v3489_v63 }
0x135f   : > { %3503 = vmatprep.subr.bf16.mxu0 %v3688_v41 }
0x13e9   : > { %v2602_v1 = vpop.xlane.xlu0 %2601 }
0x13ea   : > { %v2603_v2 = vmul.f32 0.03125, %v2602_v1 }
0x13eb   : > { %v2607_v3 = vpop.xlane.xlu1 %2606 }
0x13ec   : > { %v2610_v5 = vmul.f32 %v2603_v2, %v2603_v2  ;;  %v2608_v6 = vmul.f32 0.03125, %v2607_v3  ;;  %v2609_v10 = vsub.f32 %v4242_v55, %v2603_v2 }
0x13ee   : > { %v2611_v7 = vsub.f32 %v2608_v6, %v2610_v5 }
0x13f0   : > { %v2612_v8 = vadd.f32 1e-05, %v2611_v7 }
0x13f2   : > { %3616 = vrsqrt.f32 %v2612_v8 }
0x13fc   : > { %v3617_v11 = vpop.eup %3616 }
0x13fd   : > { %v2614_v13 = vmul.f32 %v3617_v11, %v2609_v10  ;;  %v2842_v10 = vld [vmem:[%s4387_s6 + $0xc] sm:$0x1] }
0x13ff   : > { %v2619_v15 = vmul.f32 %v3049_v12, %v2614_v13 }
0x1401   : > { %v2624_v16 = vadd.f32 %v3050_v14, %v2619_v15 }
0x1403   : > { %3386 = vmatmul.mubr.msk.f32.vlgmr.msra.gmra.mrb[32].mxu0 %vm476_vm8, %v2624_v16 }
0x1404   : > { %3415 = vmatprep.mubr.msk.f32.mxu0 %vm3689_vm7, %v3690_v45  ;;  %v3060_v45 = vld [vmem:[%s4386_s5 + $0x58] sm:$0xff]  ;;  %3505 = vmatpush3.bf16.msra.mxu0 %v3504_v48 }
0x1405   : > { %v3495_v21 = vpack.c.bf16 %v3060_v45, %v3059_v20  ;;  %3506 = vmatprep.subr.bf16.mxu0 %v3688_v41 }
0x1407   : > { %3496 = vmatpush3.bf16.msra.mxu1 %v3495_v21 }
0x1408   : > { %3497 = vmatprep.subr.bf16.mxu1 %v3688_v41  ;;  %3508 = vmatpush3.bf16.msra.mxu0 %v3507_v50 }
0x140b   : > { %3499 = vmatpush3.bf16.msra.mxu1 %v3498_v24 }
0x140c   : > { %3500 = vmatprep.subr.bf16.mxu1 %v3688_v41  ;;  %v3068_v41 = vld [vmem:[%s4387_s6 + $0xb] ss:$0 sm:$0xff] }
0x140f   : > { %3502 = vmatpush3.bf16.msra.mxu1 %v3501_v36 }
0x14d6   : > { %v2704_v26 = vpop.f32.mrb[32].mxu0 }
0x14d7   : > { %v2705_v27 = vadd.f32 %v3055_v25, %v2704_v26  ;;  %v3387_v28 = vpop.f32.mrb[33].mxu0 }
0x14d9   : > { %v2709_v29 = vmul.f32 0.70710677, %v2705_v27  ;;  %v2708_v31 = vmul.f32 0.5, %v2705_v27 }
0x14db   : > { %3618 = verf.f32 %v2709_v29 }
0x14e5   : > { %v3619_v30 = vpop.eup %3618 }
0x14e6   : > { %v2711_v32 = vadd.f32 1.0, %v3619_v30 }
0x14e8   : > { %v2712_v33 = vmul.f32 %v2711_v32, %v2708_v31 }
0x14ea   : > { %3405 = vmatmul.mubr.msk.f32.vlgmr.msra.gmra.mrb[18].mxu1 %vm479_vm9, %v2712_v33 }
0x15bd   : > { %v2791_v34 = vpop.f32.mrb[18].mxu1 }
0x15be   : > { %v2795_v37 = vadd.f32 %v2791_v34, %v4242_v55  ;;  %v3406_v38 = vpop.f32.mrb[19].mxu1 }
0x15c0   : > { %v2801_v39 = vadd.f32 %v3066_v35, %v2795_v37 }
0x15c2   : > { %v2804_v40 = vsel %vm476_vm8, %v2801_v39, 0.0  ;;  %v2808_v42 = vmul.f32 %v2801_v39, %v2801_v39 }
0x15c3   : > { %2805 = vadd.xlane.f32.xlu0 %v2804_v40 }
0x15c4   : > { %v2809_v43 = vsel %vm476_vm8, %v2808_v42, 0.0 }
0x15c7   : > { %2810 = vadd.xlane.f32.xlu0 %v2809_v43 }
0x1650   : > { %v2806_v51 = vpop.xlane.xlu0 %2805 }
0x1651   : > { %v2807_v52 = vmul.f32 0.03125, %v2806_v51 }
0x1653   : > { %v2814_v54 = vmul.f32 %v2807_v52, %v2807_v52  ;;  %v2813_v58 = vsub.f32 %v2801_v39, %v2807_v52 }
0x1654   : > { %v2811_v53 = vpop.xlane.xlu0 %2810 }
0x1655   : > { %v2812_v55 = vmul.f32 0.03125, %v2811_v53 }
0x1657   : > { %v2815_v56 = vsub.f32 %v2812_v55, %v2814_v54 }
0x1659   : > { %v2816_v57 = vadd.f32 1e-05, %v2815_v56 }
0x165b   : > { %3620 = vrsqrt.f32 %v2816_v57 }
0x1665   : > { %v3621_v59 = vpop.eup %3620 }
0x1666   : > { %v2818_v60 = vmul.f32 %v3621_v59, %v2813_v58 }
0x1668   : > { %v2823_v61 = vmul.f32 %v3067_v9, %v2818_v60 }
0x166a   : > { %v2828_v62 = vadd.f32 %v3068_v41, %v2823_v61 }
0x166c   : > { %v2829_v63 = vsel %vm476_vm8, %v2828_v62, 0.0 }
0x166d   : > { %v2830_v1 = vrot.slane %v2829_v63, 4 }
0x166f   : > { %v2831_v2 = vadd.f32 %v2830_v1, %v2829_v63 }
0x1671   : > { %v2832_v3 = vrot.slane %v2831_v2, 2 }
0x1673   : > { %v2833_v5 = vadd.f32 %v2832_v3, %v2831_v2 }
0x1675   : > { %v2834_v6 = vrot.slane %v2833_v5, 1 }
0x1677   : > { %v2835_v7 = vadd.f32 %v2834_v6, %v2833_v5 }
0x1679   : > { %v2837_v8 = vmul.f32 0.125, %v2835_v7 }
0x167b   : > { %3416 = vmatmul.mubr.msk.f32.vlgmr.msra.gmra.mrb[34].mxu0 %vm476_vm8, %v2837_v8 }
0x174e   : > { %v2912_v11 = vpop.f32.mrb[34].mxu0 }
0x174f   : > { %v2913_v12 = vadd.f32 %v2912_v11, %v2842_v10  ;;  %v3417_v13 = vpop.f32.mrb[35].mxu0 }
0x1751   : > { %2917 = vst.msk [vmem:[%s297_s20] sm:$0x1] %vm2916_vm12, %v2913_v12 }
0x1752   : > { %3635 = shalt.err (!%p3632_p3)
}
0x1753   : > { %s3636_s10 = scalar_lea.hbm %s4339_s17, 16  ;;  %s3640_s19 = scalar_lea.hbm %s4389_s8, 32 }
0x1754   : > { %p3637_p4 = scmp.ne.s32.totalorder %s4339_s17, %s3636_s10  ;;  %p3641_p9 = scmp.lt.u32.totalorder %s4339_s17, %s4389_s8 }
0x1755   : > { %p3642_p10 = scmp.lt.u32.totalorder %s3640_s19, %s3636_s10  ;;  %p3644_p12 = scmp.lt.u32.totalorder %s3636_s10, %s4339_s17 }
0x1756   : > { %p3638_p7 = pnand %p3637_p4, %p3782_p5 }
0x1757   : > { %p3643_p11 = por %p3642_p10, %p3641_p9 }
0x1758   : > { %p3639_p8 = pneg %p3638_p7 }
0x1759   : > { %p3645_p13 = por %p3644_p12, %p3643_p11 }
0x175b   : > { %p3646_p0 = pnand %p3645_p13, %p3639_p8 }
0x175d   : > { %3649 = shalt.err (!%p3646_p0)
}
0x175e   : > { %3509 = dma.vmem_to_hbm [thread:$0]  (%p3782_p5), %s4341_s21, 16, %s4339_s17, %s2919_s22  }
0x175f PF: > { %p3515_p1 = scmp.ge.s32.totalorder %s3684_s30, 2  ;;  %s2943_s13 = sand.u32 1, %s3672_s27  }
0x1760   : > { %s2944_s23 = scalar_lea.sflag [#allocation3], %s2943_s13 }
0x1761   : > { %p3512_p2 = pnand %p3515_p1, %p3786_p6 }
0x1763   : > { %3667 = dma.done.wait (!%p3512_p2), %s2944_s23, 16  }
0x1764   : > { %3669 = vsyncadd (!%p3512_p2), %s2944_s23, 4294967280  ;;  %p18_p3 = scmp.ge.s32.totalorder %s3769_s11, 4   ;;  %s4400_s27 = smov %s3676_s28 }
0x1765   : > { %s4401_s28 = smov %s3680_s29  ;;  %s4402_s29 = smov %s3780_s14 }
0x1766   : > { %s4403_s30 = smov %s3769_s11  ;;  %20 = sbr.rel (!%p18_p3) target bundleno = 3 (0x3), region = 91 }
0x176d   :  { %2948 = vsyncpa [#allocation3], 1 }
0x176e   :  { %2950 = vsyncpa [#allocation3 + $0x1], 1 }

</bundles_post_ra>
